<compile_context>
chip_gen: v5e
topology: v5e:2x2
jax: 0.10.0
libtpu: 0.0.40
codegen_flags: <defaults>
</compile_context>

<pallas_src>
import jax
import jax.numpy as jnp
from jax.experimental import pallas as pl
from jax.experimental.pallas import tpu as pltpu


_WEIGHT_KEYS = (
    "fw1", "fb1", "fw2", "fb2",
    "gw1a", "gw1b", "gb1", "gw2", "gb2",
    "hw1a", "hw1b", "hb1", "hw2", "hb2",
    "ow", "ob",
)
_MAT_KEYS = ("fw1", "fw2", "gw1a", "gw1b", "gw2", "hw1a", "hw1b", "hw2", "ow")


# ---------------------------------------------------------------------------
# Single fused kernel: F MLP -> attention -> G MLP + seq-sum -> H MLP ->
# output Linear -> LogSoftmax.  One grid step processes a block of batch rows.
# ---------------------------------------------------------------------------
def _make_kernel(l_a, l_b):
    def kernel(ab_ref,
               fw1_ref, fb1_ref, fw2_ref, fb2_ref,
               gw1a_ref, gw1b_ref, gb1_ref, gw2_ref, gb2_ref,
               hw1a_ref, hw1b_ref, hb1_ref, hw2_ref, hb2_ref,
               ow_ref, ob_ref,
               out_ref):
        Bb, L, H = ab_ref.shape
        f32 = jnp.float32
        cdt = fw1_ref.dtype          # MXU operand dtype (bf16 fast / f32 exact)

        def mm(x, w_ref):            # matmul: cdt operands, f32 accumulation
            return jnp.dot(x.astype(cdt), w_ref[...],
                           preferred_element_type=f32)

        def bmm(eq, x, y):           # batched einsum, cdt operands, f32 acc
            return jnp.einsum(eq, x.astype(cdt), y.astype(cdt),
                              preferred_element_type=f32)

        # ---- F MLP on the pre-stacked (a ++ b) rows: one big matmul --------
        x2 = ab_ref[...].reshape(Bb * L, H)
        h = jnp.maximum(mm(x2, fw1_ref) + fb1_ref[...], 0.0)
        xf = jnp.maximum(mm(h, fw2_ref) + fb2_ref[...], 0.0)   # (Bb*L, H) f32
        xf3 = xf.reshape(Bb, L, H)
        a_f = xf3[:, :l_a, :]                                   # (Bb, La, H)
        b_f = xf3[:, l_a:, :]                                   # (Bb, Lb, H)

        # ---- attention: ONE score matmul, two softmax axes -----------------
        e = bmm('bqd,bkd->bqk', a_f, b_f)                       # (Bb, La, Lb)

        # softmax over k (lane axis) -> probabilities for beta
        mk = jnp.max(e, axis=2, keepdims=True)
        pk = jnp.exp(e - mk)
        p_ab = pk / jnp.sum(pk, axis=2, keepdims=True)
        # softmax over q (sublane axis, cheap XLU reduce) -> probs for alpha
        mq = jnp.max(e, axis=1, keepdims=True)
        pq = jnp.exp(e - mq)
        p_ba = pq / jnp.sum(pq, axis=1, keepdims=True)

        beta = bmm('bqk,bkd->bqd', p_ab, b_f)                   # (Bb, La, H)
        alpha = bmm('bqk,bqd->bkd', p_ba, a_f)                  # (Bb, Lb, H)
        att = jnp.concatenate([beta, alpha], axis=1).reshape(Bb * L, H)

        # ---- G MLP on all rows; the (2H, H) weight split into two halves ---
        g1 = jnp.maximum(mm(xf, gw1a_ref) + mm(att, gw1b_ref) + gb1_ref[...],
                         0.0)
        g2 = jnp.maximum(mm(g1, gw2_ref) + gb2_ref[...], 0.0)
        g3 = g2.reshape(Bb, L, H)
        v1 = jnp.sum(g3[:, :l_a, :], axis=1)                    # (Bb, H)
        v2 = jnp.sum(g3[:, l_a:, :], axis=1)                    # (Bb, H)

        # ---- H MLP + output Linear + LogSoftmax over classes ----------------
        h1 = jnp.maximum(mm(v1, hw1a_ref) + mm(v2, hw1b_ref) + hb1_ref[...],
                         0.0)
        h2 = jnp.maximum(mm(h1, hw2_ref) + hb2_ref[...], 0.0)
        logits = mm(h2, ow_ref) + ob_ref[...]                   # (Bb, O)

        m = jnp.max(logits, axis=-1, keepdims=True)
        z = logits - m
        lse = jnp.log(jnp.sum(jnp.exp(z), axis=-1, keepdims=True))
        out_ref[...] = (z - lse).reshape(Bb, 1, -1)

    return kernel


# ---------------------------------------------------------------------------
# Wrapper helpers
# ---------------------------------------------------------------------------
def _default_batch_block(B, l_a, l_b):
    """>= 2 grid steps; prefer an MXU M (= Bb*(La+Lb)) that is a 128-multiple."""
    if B <= 1:
        return max(B, 1)
    rows = l_a + l_b
    divisors = [d for d in range(1, B // 2 + 1) if B % d == 0]
    aligned = [d for d in divisors if (d * rows) % 128 == 0]
    pool = aligned if aligned else divisors
    fitting = [d for d in pool if d * rows <= 512]   # keep VMEM bounded
    return fitting[-1] if fitting else pool[0]


def _vmem_limit_bytes(batch_block, l_a, l_b, H, weight_bytes):
    rows = batch_block * (l_a + l_b)
    act = rows * H * 4                        # one f32 activation slab
    score = batch_block * l_a * l_b * 4       # one f32 (Bb, La, Lb) slab
    inputs = 2 * rows * H * 4                 # stacked input, double-buffered
    live = 10 * act + 4 * score               # xf/att/g1/g2 + e/p_ab/p_ba/...
    est = int(1.5 * (inputs + live + 2 * weight_bytes)) + (2 << 20)
    # Floor keeps the compiler comfortable at toy sizes; cap stays inside
    # v7x's 64 MiB physical VMEM (v5e/v6e have 128 MiB).
    return max(24 << 20, min(est, 60 << 20))


# ---------------------------------------------------------------------------
# Wrapper
# ---------------------------------------------------------------------------
def self_attention_forward(a, b, params, *, batch_block=None,
                           compute_dtype=jnp.bfloat16):
    B, l_a, H = a.shape
    B2, l_b, H2 = b.shape
    assert B2 == B and H2 == H
    O = params["ob"].shape[-1]
    L = l_a + l_b

    if batch_block is None:
        batch_block = _default_batch_block(B, l_a, l_b)
    assert B % batch_block == 0, "batch_block must divide B"
    grid = (B // batch_block,)

    # Stack a and b along the sequence axis in the wrapper (layout plumbing in
    # XLA): one HBM input, one DMA stream, no in-kernel concatenate.
    ab = jnp.concatenate([a, b], axis=1).astype(compute_dtype)    # (B, L, H)

    # Matrices in compute_dtype (MXU operands); biases stay f32 (VPU math f32).
    weights = [params[k].astype(compute_dtype) if k in _MAT_KEYS
               else params[k].astype(jnp.float32) for k in _WEIGHT_KEYS]
    weight_bytes = sum(int(w.size) * w.dtype.itemsize for w in weights)

    kernel = _make_kernel(l_a, l_b)
    # Output kept 3-D (B, 1, O) so the block's last two dims always equal the
    # full array dims regardless of batch_block (no (8,128) tiling issues).
    out_shape = jax.ShapeDtypeStruct((B, 1, O), jnp.float32)
    in_spec_ab = pl.BlockSpec((batch_block, L, H), lambda i: (i, 0, 0))
    out_spec = pl.BlockSpec((batch_block, 1, O), lambda i: (i, 0, 0))
    cparams = pltpu.CompilerParams(
        dimension_semantics=("parallel",),
        vmem_limit_bytes=_vmem_limit_bytes(batch_block, l_a, l_b, H,
                                           weight_bytes))

    def build(single_buffer_weights):
        def wspec(w):
            if single_buffer_weights:
                # Constant-index weights: no double buffering -> half the VMEM.
                return pl.BlockSpec(w.shape, lambda i: (0, 0),
                                    pipeline_mode=pl.Buffered(1))
            return pl.BlockSpec(w.shape, lambda i: (0, 0))
        return pl.pallas_call(
            kernel,
            out_shape=out_shape,
            grid=grid,
            in_specs=[in_spec_ab, *(wspec(w) for w in weights)],
            out_specs=out_spec,
            compiler_params=cparams,
        )

    try:
        out = build(True)(ab, *weights)
    except Exception:
        # Fallback for jax builds without BlockSpec pipeline_mode=Buffered():
        # identical semantics, default (double-buffered) weight blocks.
        out = build(False)(ab, *weights)
    return out.reshape(B, O)


def init_params(key, hidden_dim, output_dim):
    H, O = hidden_dim, output_dim
    s = 0.1
    ks = jax.random.split(key, 16)
    shapes = {
        # F: Linear(H,H) ReLU Linear(H,H) ReLU
        "fw1": (H, H), "fb1": (1, H), "fw2": (H, H), "fb2": (1, H),
        # G: Linear(2H,H) split into two (H,H) halves, then Linear(H,H)
        "gw1a": (H, H), "gw1b": (H, H), "gb1": (1, H),
        "gw2": (H, H), "gb2": (1, H),
        # H: Linear(2H,H) split, then Linear(H,H)
        "hw1a": (H, H), "hw1b": (H, H), "hb1": (1, H),
        "hw2": (H, H), "hb2": (1, H),
        # output: Linear(H, O)
        "ow": (H, O), "ob": (1, O),
    }
    # Note: weights are input-major (in_dim, out_dim); PyTorch nn.Linear stores
    # (out, in) -> transpose when importing real checkpoints.
    return {k: s * jax.random.normal(ks[i], shapes[k], jnp.float32)
            for i, k in enumerate(_WEIGHT_KEYS)}


# Pure-JAX reference of the PyTorch forward (for a correctness check only).
def _reference(a, b, p):
    B, l_a, H = a.shape
    l_b = b.shape[1]

    def mlp2(x, w1, b1, w2, b2):
        h = jnp.maximum(x @ w1 + b1, 0.0)
        return jnp.maximum(h @ w2 + b2, 0.0)

    a_f = mlp2(a.reshape(-1, H), p["fw1"], p["fb1"],
               p["fw2"], p["fb2"]).reshape(B, l_a, H)
    b_f = mlp2(b.reshape(-1, H), p["fw1"], p["fb1"],
               p["fw2"], p["fb2"]).reshape(B, l_b, H)
    e = jnp.einsum('bqd,bkd->bqk', a_f, b_f)
    beta = jnp.einsum('bqk,bkd->bqd', jax.nn.softmax(e, axis=2), b_f)
    alpha = jnp.einsum('bkq,bqd->bkd',
                       jax.nn.softmax(jnp.swapaxes(e, 1, 2), axis=2), a_f)

    def g(x, y):
        h = jnp.maximum(x @ p["gw1a"] + y @ p["gw1b"] + p["gb1"], 0.0)
        return jnp.maximum(h @ p["gw2"] + p["gb2"], 0.0)

    v1 = jnp.sum(g(a_f, beta), axis=1)
    v2 = jnp.sum(g(b_f, alpha), axis=1)
    h1 = jnp.maximum(v1 @ p["hw1a"] + v2 @ p["hw1b"] + p["hb1"], 0.0)
    h2 = jnp.maximum(h1 @ p["hw2"] + p["hb2"], 0.0)
    logits = h2 @ p["ow"] + p["ob"]
    return jax.nn.log_softmax(logits, axis=1)


if __name__ == "__main__":
    B, l_a, l_b, H, O = 2, 8, 8, 32, 8

    key = jax.random.PRNGKey(0)
    ka, kb, kp = jax.random.split(key, 3)
    a = jax.random.normal(ka, (B, l_a, H), jnp.float32)
    b = jax.random.normal(kb, (B, l_b, H), jnp.float32)
    params = init_params(kp, H, O)

    ref = _reference(a, b, params)

    # Exact-arithmetic mode: f32 MXU operands, exact softmax -> tight parity.
    out_f32 = self_attention_forward(a, b, params, compute_dtype=jnp.float32)
    jax.block_until_ready(out_f32)
    assert out_f32.shape == (B, O), out_f32.shape
    assert jnp.allclose(out_f32, ref, rtol=1e-4, atol=1e-4), (
        float(jnp.max(jnp.abs(out_f32 - ref))))

    # Default fast mode: bf16 MXU operands with f32 accumulation.
    out = self_attention_forward(a, b, params)
    jax.block_until_ready(out)
    assert out.shape == (B, O), out.shape
    assert jnp.allclose(out, ref, rtol=5e-2, atol=1e-1), (
        float(jnp.max(jnp.abs(out - ref))))

    print("KERNEL_OK")
</pallas_src>

<mosaic_0001>
module attributes {stable_mosaic.version = 11 : i64} {
  func.func @kernel(%arg0: i32, %arg1: memref<1x16x32xf32, #tpu.memory_space<vmem>>, %arg2: memref<32x32xf32, #tpu.memory_space<vmem>>, %arg3: memref<1x32xf32, #tpu.memory_space<vmem>>, %arg4: memref<32x32xf32, #tpu.memory_space<vmem>>, %arg5: memref<1x32xf32, #tpu.memory_space<vmem>>, %arg6: memref<32x32xf32, #tpu.memory_space<vmem>>, %arg7: memref<32x32xf32, #tpu.memory_space<vmem>>, %arg8: memref<1x32xf32, #tpu.memory_space<vmem>>, %arg9: memref<32x32xf32, #tpu.memory_space<vmem>>, %arg10: memref<1x32xf32, #tpu.memory_space<vmem>>, %arg11: memref<32x32xf32, #tpu.memory_space<vmem>>, %arg12: memref<32x32xf32, #tpu.memory_space<vmem>>, %arg13: memref<1x32xf32, #tpu.memory_space<vmem>>, %arg14: memref<32x32xf32, #tpu.memory_space<vmem>>, %arg15: memref<1x32xf32, #tpu.memory_space<vmem>>, %arg16: memref<32x8xf32, #tpu.memory_space<vmem>>, %arg17: memref<1x8xf32, #tpu.memory_space<vmem>>, %arg18: memref<1x1x8xf32, #tpu.memory_space<vmem>>) attributes {dimension_semantics = [#tpu.dimension_semantics<parallel>], iteration_bounds = array<i64: 2>, scalar_prefetch = 0 : i64, scratch_operands = 0 : i64, tpu.core_type = #tpu.core_type<tc>, window_params = [{transform_indices = @transform_0, window_bounds = array<i64: 1, 16, 32>}, {pipeline_mode = #tpu.pipeline_mode<synchronous>, transform_indices = @transform_1, window_bounds = array<i64: 32, 32>}, {pipeline_mode = #tpu.pipeline_mode<synchronous>, transform_indices = @transform_2, window_bounds = array<i64: 1, 32>}, {pipeline_mode = #tpu.pipeline_mode<synchronous>, transform_indices = @transform_3, window_bounds = array<i64: 32, 32>}, {pipeline_mode = #tpu.pipeline_mode<synchronous>, transform_indices = @transform_4, window_bounds = array<i64: 1, 32>}, {pipeline_mode = #tpu.pipeline_mode<synchronous>, transform_indices = @transform_5, window_bounds = array<i64: 32, 32>}, {pipeline_mode = #tpu.pipeline_mode<synchronous>, transform_indices = @transform_6, window_bounds = array<i64: 32, 32>}, {pipeline_mode = #tpu.pipeline_mode<synchronous>, transform_indices = @transform_7, window_bounds = array<i64: 1, 32>}, {pipeline_mode = #tpu.pipeline_mode<synchronous>, transform_indices = @transform_8, window_bounds = array<i64: 32, 32>}, {pipeline_mode = #tpu.pipeline_mode<synchronous>, transform_indices = @transform_9, window_bounds = array<i64: 1, 32>}, {pipeline_mode = #tpu.pipeline_mode<synchronous>, transform_indices = @transform_10, window_bounds = array<i64: 32, 32>}, {pipeline_mode = #tpu.pipeline_mode<synchronous>, transform_indices = @transform_11, window_bounds = array<i64: 32, 32>}, {pipeline_mode = #tpu.pipeline_mode<synchronous>, transform_indices = @transform_12, window_bounds = array<i64: 1, 32>}, {pipeline_mode = #tpu.pipeline_mode<synchronous>, transform_indices = @transform_13, window_bounds = array<i64: 32, 32>}, {pipeline_mode = #tpu.pipeline_mode<synchronous>, transform_indices = @transform_14, window_bounds = array<i64: 1, 32>}, {pipeline_mode = #tpu.pipeline_mode<synchronous>, transform_indices = @transform_15, window_bounds = array<i64: 32, 8>}, {pipeline_mode = #tpu.pipeline_mode<synchronous>, transform_indices = @transform_16, window_bounds = array<i64: 1, 8>}, {transform_indices = @transform_17, window_bounds = array<i64: 1, 1, 8>}]} {
    %c0 = arith.constant 0 : index
    %c0_0 = arith.constant 0 : index
    %c0_1 = arith.constant 0 : index
    %0 = vector.load %arg1[%c0, %c0_0, %c0_1] : memref<1x16x32xf32, #tpu.memory_space<vmem>>, vector<1x16x32xf32>
    %1 = vector.shape_cast %0 : vector<1x16x32xf32> to vector<16x32xf32>
    %c0_2 = arith.constant 0 : index
    %c0_3 = arith.constant 0 : index
    %2 = vector.load %arg2[%c0_2, %c0_3] : memref<32x32xf32, #tpu.memory_space<vmem>>, vector<32x32xf32>
    %cst = arith.constant dense<0.000000e+00> : vector<16x32xf32>
    %3 = tpu.matmul %1, %2, %cst {dimension_numbers = #tpu.dot_dimension_numbers<[1], [0], [0], [1], [0, 0, 1, 1], [], []>} : vector<16x32xf32>, vector<32x32xf32>, vector<16x32xf32> -> vector<16x32xf32>
    %c0_4 = arith.constant 0 : index
    %c0_5 = arith.constant 0 : index
    %4 = vector.load %arg3[%c0_4, %c0_5] : memref<1x32xf32, #tpu.memory_space<vmem>>, vector<1x32xf32>
    %5 = vector.broadcast %4 : vector<1x32xf32> to vector<16x32xf32>
    %6 = arith.addf %3, %5 : vector<16x32xf32>
    %cst_6 = arith.constant 0.000000e+00 : f32
    %7 = vector.broadcast %cst_6 : f32 to vector<16x32xf32>
    %8 = arith.maximumf %6, %7 : vector<16x32xf32>
    %c0_7 = arith.constant 0 : index
    %c0_8 = arith.constant 0 : index
    %9 = vector.load %arg4[%c0_7, %c0_8] : memref<32x32xf32, #tpu.memory_space<vmem>>, vector<32x32xf32>
    %cst_9 = arith.constant dense<0.000000e+00> : vector<16x32xf32>
    %10 = tpu.matmul %8, %9, %cst_9 {dimension_numbers = #tpu.dot_dimension_numbers<[1], [0], [0], [1], [0, 0, 1, 1], [], []>} : vector<16x32xf32>, vector<32x32xf32>, vector<16x32xf32> -> vector<16x32xf32>
    %c0_10 = arith.constant 0 : index
    %c0_11 = arith.constant 0 : index
    %11 = vector.load %arg5[%c0_10, %c0_11] : memref<1x32xf32, #tpu.memory_space<vmem>>, vector<1x32xf32>
    %12 = vector.broadcast %11 : vector<1x32xf32> to vector<16x32xf32>
    %13 = arith.addf %10, %12 : vector<16x32xf32>
    %cst_12 = arith.constant 0.000000e+00 : f32
    %14 = vector.broadcast %cst_12 : f32 to vector<16x32xf32>
    %15 = arith.maximumf %13, %14 : vector<16x32xf32>
    %16 = vector.shape_cast %15 : vector<16x32xf32> to vector<1x16x32xf32>
    %17 = vector.extract_strided_slice %16 {offsets = [0, 0, 0], sizes = [1, 8, 32], strides = [1, 1, 1]} : vector<1x16x32xf32> to vector<1x8x32xf32>
    %18 = vector.extract_strided_slice %16 {offsets = [0, 8, 0], sizes = [1, 8, 32], strides = [1, 1, 1]} : vector<1x16x32xf32> to vector<1x8x32xf32>
    "tpu.trace_start"() <{level = 10 : i32, message = "bqd,bkd->bqk"}> : () -> ()
    %cst_13 = arith.constant dense<0.000000e+00> : vector<1x8x8xf32>
    %19 = tpu.matmul %17, %18, %cst_13 {dimension_numbers = #tpu.dot_dimension_numbers<[2], [2], [1], [1], [0, 0, 0, 1, 1, 1], [0], [0]>} : vector<1x8x32xf32>, vector<1x8x32xf32>, vector<1x8x8xf32> -> vector<1x8x8xf32>
    "tpu.trace_stop"() : () -> ()
    %cst_14 = arith.constant dense<0xFF800000> : vector<1x8xf32>
    %20 = vector.multi_reduction <maximumf>, %19, %cst_14 [2] : vector<1x8x8xf32> to vector<1x8xf32>
    %21 = vector.shape_cast %20 : vector<1x8xf32> to vector<1x8x1xf32>
    %22 = vector.broadcast %21 : vector<1x8x1xf32> to vector<1x8x8xf32>
    %23 = arith.subf %19, %22 : vector<1x8x8xf32>
    %24 = math.exp %23 : vector<1x8x8xf32>
    %cst_15 = arith.constant dense<0.000000e+00> : vector<1x8xf32>
    %25 = vector.multi_reduction <add>, %24, %cst_15 [2] : vector<1x8x8xf32> to vector<1x8xf32>
    %26 = vector.shape_cast %25 : vector<1x8xf32> to vector<1x8x1xf32>
    %27 = vector.broadcast %26 : vector<1x8x1xf32> to vector<1x8x8xf32>
    %28 = arith.divf %24, %27 : vector<1x8x8xf32>
    %cst_16 = arith.constant dense<0xFF800000> : vector<1x8xf32>
    %29 = vector.multi_reduction <maximumf>, %19, %cst_16 [1] : vector<1x8x8xf32> to vector<1x8xf32>
    %30 = vector.shape_cast %29 : vector<1x8xf32> to vector<1x1x8xf32>
    %31 = vector.broadcast %30 : vector<1x1x8xf32> to vector<1x8x8xf32>
    %32 = arith.subf %19, %31 : vector<1x8x8xf32>
    %33 = math.exp %32 : vector<1x8x8xf32>
    %cst_17 = arith.constant dense<0.000000e+00> : vector<1x8xf32>
    %34 = vector.multi_reduction <add>, %33, %cst_17 [1] : vector<1x8x8xf32> to vector<1x8xf32>
    %35 = vector.shape_cast %34 : vector<1x8xf32> to vector<1x1x8xf32>
    %36 = vector.broadcast %35 : vector<1x1x8xf32> to vector<1x8x8xf32>
    %37 = arith.divf %33, %36 : vector<1x8x8xf32>
    "tpu.trace_start"() <{level = 10 : i32, message = "bqk,bkd->bqd"}> : () -> ()
    %cst_18 = arith.constant dense<0.000000e+00> : vector<1x8x32xf32>
    %38 = tpu.matmul %28, %18, %cst_18 {dimension_numbers = #tpu.dot_dimension_numbers<[2], [1], [1], [2], [0, 0, 0, 1, 1, 2], [0], [0]>} : vector<1x8x8xf32>, vector<1x8x32xf32>, vector<1x8x32xf32> -> vector<1x8x32xf32>
    "tpu.trace_stop"() : () -> ()
    "tpu.trace_start"() <{level = 10 : i32, message = "bqk,bqd->bkd"}> : () -> ()
    %cst_19 = arith.constant dense<0.000000e+00> : vector<1x8x32xf32>
    %39 = tpu.matmul %37, %17, %cst_19 {dimension_numbers = #tpu.dot_dimension_numbers<[1], [1], [2], [2], [0, 0, 0, 2, 1, 2], [0], [0]>} : vector<1x8x8xf32>, vector<1x8x32xf32>, vector<1x8x32xf32> -> vector<1x8x32xf32>
    "tpu.trace_stop"() : () -> ()
    %40 = tpu.concatenate %38, %39 in 1 : vector<1x8x32xf32>, vector<1x8x32xf32> -> vector<1x16x32xf32>
    %41 = vector.shape_cast %40 : vector<1x16x32xf32> to vector<16x32xf32>
    %c0_20 = arith.constant 0 : index
    %c0_21 = arith.constant 0 : index
    %42 = vector.load %arg6[%c0_20, %c0_21] : memref<32x32xf32, #tpu.memory_space<vmem>>, vector<32x32xf32>
    %cst_22 = arith.constant dense<0.000000e+00> : vector<16x32xf32>
    %43 = tpu.matmul %15, %42, %cst_22 {dimension_numbers = #tpu.dot_dimension_numbers<[1], [0], [0], [1], [0, 0, 1, 1], [], []>} : vector<16x32xf32>, vector<32x32xf32>, vector<16x32xf32> -> vector<16x32xf32>
    %c0_23 = arith.constant 0 : index
    %c0_24 = arith.constant 0 : index
    %44 = vector.load %arg7[%c0_23, %c0_24] : memref<32x32xf32, #tpu.memory_space<vmem>>, vector<32x32xf32>
    %cst_25 = arith.constant dense<0.000000e+00> : vector<16x32xf32>
    %45 = tpu.matmul %41, %44, %cst_25 {dimension_numbers = #tpu.dot_dimension_numbers<[1], [0], [0], [1], [0, 0, 1, 1], [], []>} : vector<16x32xf32>, vector<32x32xf32>, vector<16x32xf32> -> vector<16x32xf32>
    %46 = arith.addf %43, %45 : vector<16x32xf32>
    %c0_26 = arith.constant 0 : index
    %c0_27 = arith.constant 0 : index
    %47 = vector.load %arg8[%c0_26, %c0_27] : memref<1x32xf32, #tpu.memory_space<vmem>>, vector<1x32xf32>
    %48 = vector.broadcast %47 : vector<1x32xf32> to vector<16x32xf32>
    %49 = arith.addf %46, %48 : vector<16x32xf32>
    %cst_28 = arith.constant 0.000000e+00 : f32
    %50 = vector.broadcast %cst_28 : f32 to vector<16x32xf32>
    %51 = arith.maximumf %49, %50 : vector<16x32xf32>
    %c0_29 = arith.constant 0 : index
    %c0_30 = arith.constant 0 : index
    %52 = vector.load %arg9[%c0_29, %c0_30] : memref<32x32xf32, #tpu.memory_space<vmem>>, vector<32x32xf32>
    %cst_31 = arith.constant dense<0.000000e+00> : vector<16x32xf32>
    %53 = tpu.matmul %51, %52, %cst_31 {dimension_numbers = #tpu.dot_dimension_numbers<[1], [0], [0], [1], [0, 0, 1, 1], [], []>} : vector<16x32xf32>, vector<32x32xf32>, vector<16x32xf32> -> vector<16x32xf32>
    %c0_32 = arith.constant 0 : index
    %c0_33 = arith.constant 0 : index
    %54 = vector.load %arg10[%c0_32, %c0_33] : memref<1x32xf32, #tpu.memory_space<vmem>>, vector<1x32xf32>
    %55 = vector.broadcast %54 : vector<1x32xf32> to vector<16x32xf32>
    %56 = arith.addf %53, %55 : vector<16x32xf32>
    %cst_34 = arith.constant 0.000000e+00 : f32
    %57 = vector.broadcast %cst_34 : f32 to vector<16x32xf32>
    %58 = arith.maximumf %56, %57 : vector<16x32xf32>
    %59 = vector.shape_cast %58 : vector<16x32xf32> to vector<1x16x32xf32>
    %60 = vector.extract_strided_slice %59 {offsets = [0, 0, 0], sizes = [1, 8, 32], strides = [1, 1, 1]} : vector<1x16x32xf32> to vector<1x8x32xf32>
    %cst_35 = arith.constant dense<0.000000e+00> : vector<1x32xf32>
    %61 = vector.multi_reduction <add>, %60, %cst_35 [1] : vector<1x8x32xf32> to vector<1x32xf32>
    %62 = vector.extract_strided_slice %59 {offsets = [0, 8, 0], sizes = [1, 8, 32], strides = [1, 1, 1]} : vector<1x16x32xf32> to vector<1x8x32xf32>
    %cst_36 = arith.constant dense<0.000000e+00> : vector<1x32xf32>
    %63 = vector.multi_reduction <add>, %62, %cst_36 [1] : vector<1x8x32xf32> to vector<1x32xf32>
    %c0_37 = arith.constant 0 : index
    %c0_38 = arith.constant 0 : index
    %64 = vector.load %arg11[%c0_37, %c0_38] : memref<32x32xf32, #tpu.memory_space<vmem>>, vector<32x32xf32>
    %cst_39 = arith.constant dense<0.000000e+00> : vector<1x32xf32>
    %65 = tpu.matmul %61, %64, %cst_39 {dimension_numbers = #tpu.dot_dimension_numbers<[1], [0], [0], [1], [0, 0, 1, 1], [], []>} : vector<1x32xf32>, vector<32x32xf32>, vector<1x32xf32> -> vector<1x32xf32>
    %c0_40 = arith.constant 0 : index
    %c0_41 = arith.constant 0 : index
    %66 = vector.load %arg12[%c0_40, %c0_41] : memref<32x32xf32, #tpu.memory_space<vmem>>, vector<32x32xf32>
    %cst_42 = arith.constant dense<0.000000e+00> : vector<1x32xf32>
    %67 = tpu.matmul %63, %66, %cst_42 {dimension_numbers = #tpu.dot_dimension_numbers<[1], [0], [0], [1], [0, 0, 1, 1], [], []>} : vector<1x32xf32>, vector<32x32xf32>, vector<1x32xf32> -> vector<1x32xf32>
    %68 = arith.addf %65, %67 : vector<1x32xf32>
    %c0_43 = arith.constant 0 : index
    %c0_44 = arith.constant 0 : index
    %69 = vector.load %arg13[%c0_43, %c0_44] : memref<1x32xf32, #tpu.memory_space<vmem>>, vector<1x32xf32>
    %70 = arith.addf %68, %69 : vector<1x32xf32>
    %cst_45 = arith.constant 0.000000e+00 : f32
    %71 = vector.broadcast %cst_45 : f32 to vector<1x32xf32>
    %72 = arith.maximumf %70, %71 : vector<1x32xf32>
    %c0_46 = arith.constant 0 : index
    %c0_47 = arith.constant 0 : index
    %73 = vector.load %arg14[%c0_46, %c0_47] : memref<32x32xf32, #tpu.memory_space<vmem>>, vector<32x32xf32>
    %cst_48 = arith.constant dense<0.000000e+00> : vector<1x32xf32>
    %74 = tpu.matmul %72, %73, %cst_48 {dimension_numbers = #tpu.dot_dimension_numbers<[1], [0], [0], [1], [0, 0, 1, 1], [], []>} : vector<1x32xf32>, vector<32x32xf32>, vector<1x32xf32> -> vector<1x32xf32>
    %c0_49 = arith.constant 0 : index
    %c0_50 = arith.constant 0 : index
    %75 = vector.load %arg15[%c0_49, %c0_50] : memref<1x32xf32, #tpu.memory_space<vmem>>, vector<1x32xf32>
    %76 = arith.addf %74, %75 : vector<1x32xf32>
    %cst_51 = arith.constant 0.000000e+00 : f32
    %77 = vector.broadcast %cst_51 : f32 to vector<1x32xf32>
    %78 = arith.maximumf %76, %77 : vector<1x32xf32>
    %c0_52 = arith.constant 0 : index
    %c0_53 = arith.constant 0 : index
    %79 = vector.load %arg16[%c0_52, %c0_53] : memref<32x8xf32, #tpu.memory_space<vmem>>, vector<32x8xf32>
    %cst_54 = arith.constant dense<0.000000e+00> : vector<1x8xf32>
    %80 = tpu.matmul %78, %79, %cst_54 {dimension_numbers = #tpu.dot_dimension_numbers<[1], [0], [0], [1], [0, 0, 1, 1], [], []>} : vector<1x32xf32>, vector<32x8xf32>, vector<1x8xf32> -> vector<1x8xf32>
    %c0_55 = arith.constant 0 : index
    %c0_56 = arith.constant 0 : index
    %81 = vector.load %arg17[%c0_55, %c0_56] : memref<1x8xf32, #tpu.memory_space<vmem>>, vector<1x8xf32>
    %82 = arith.addf %80, %81 : vector<1x8xf32>
    %cst_57 = arith.constant dense<0xFF800000> : vector<1xf32>
    %83 = vector.multi_reduction <maximumf>, %82, %cst_57 [1] : vector<1x8xf32> to vector<1xf32>
    %84 = vector.shape_cast %83 : vector<1xf32> to vector<1x1xf32>
    %85 = vector.broadcast %84 : vector<1x1xf32> to vector<1x8xf32>
    %86 = arith.subf %82, %85 : vector<1x8xf32>
    %87 = math.exp %86 : vector<1x8xf32>
    %cst_58 = arith.constant dense<0.000000e+00> : vector<1xf32>
    %88 = vector.multi_reduction <add>, %87, %cst_58 [1] : vector<1x8xf32> to vector<1xf32>
    %89 = vector.shape_cast %88 : vector<1xf32> to vector<1x1xf32>
    %90 = math.log %89 : vector<1x1xf32>
    %91 = vector.broadcast %90 : vector<1x1xf32> to vector<1x8xf32>
    %92 = arith.subf %86, %91 : vector<1x8xf32>
    %93 = vector.shape_cast %92 : vector<1x8xf32> to vector<1x1x8xf32>
    %c0_59 = arith.constant 0 : index
    %c0_60 = arith.constant 0 : index
    %c0_61 = arith.constant 0 : index
    %94 = vector.load %arg18[%c0_59, %c0_60, %c0_61] : memref<1x1x8xf32, #tpu.memory_space<vmem>>, vector<1x1x8xf32>
    tpu.vector_store %arg18[%c0_59, %c0_60, %c0_61], %93 {strides = array<i32>} : memref<1x1x8xf32, #tpu.memory_space<vmem>>, vector<1x1x8xf32>,
    return
  }
  func.func @transform_0(%arg0: i32) -> (i32, i32, i32) {
    %c0_i32 = arith.constant 0 : i32
    %c0_i32_0 = arith.constant 0 : i32
    %c0_i32_1 = arith.constant 0 : i32
    return %arg0, %c0_i32, %c0_i32_0 : i32, i32, i32
  }
  func.func @transform_1(%arg0: i32) -> (i32, i32) {
    %c0_i32 = arith.constant 0 : i32
    %c0_i32_0 = arith.constant 0 : i32
    %c0_i32_1 = arith.constant 0 : i32
    return %c0_i32, %c0_i32_0 : i32, i32
  }
  func.func @transform_2(%arg0: i32) -> (i32, i32) {
    %c0_i32 = arith.constant 0 : i32
    %c0_i32_0 = arith.constant 0 : i32
    %c0_i32_1 = arith.constant 0 : i32
    return %c0_i32, %c0_i32_0 : i32, i32
  }
  func.func @transform_3(%arg0: i32) -> (i32, i32) {
    %c0_i32 = arith.constant 0 : i32
    %c0_i32_0 = arith.constant 0 : i32
    %c0_i32_1 = arith.constant 0 : i32
    return %c0_i32, %c0_i32_0 : i32, i32
  }
  func.func @transform_4(%arg0: i32) -> (i32, i32) {
    %c0_i32 = arith.constant 0 : i32
    %c0_i32_0 = arith.constant 0 : i32
    %c0_i32_1 = arith.constant 0 : i32
    return %c0_i32, %c0_i32_0 : i32, i32
  }
  func.func @transform_5(%arg0: i32) -> (i32, i32) {
    %c0_i32 = arith.constant 0 : i32
    %c0_i32_0 = arith.constant 0 : i32
    %c0_i32_1 = arith.constant 0 : i32
    return %c0_i32, %c0_i32_0 : i32, i32
  }
  func.func @transform_6(%arg0: i32) -> (i32, i32) {
    %c0_i32 = arith.constant 0 : i32
    %c0_i32_0 = arith.constant 0 : i32
    %c0_i32_1 = arith.constant 0 : i32
    return %c0_i32, %c0_i32_0 : i32, i32
  }
  func.func @transform_7(%arg0: i32) -> (i32, i32) {
    %c0_i32 = arith.constant 0 : i32
    %c0_i32_0 = arith.constant 0 : i32
    %c0_i32_1 = arith.constant 0 : i32
    return %c0_i32, %c0_i32_0 : i32, i32
  }
  func.func @transform_8(%arg0: i32) -> (i32, i32) {
    %c0_i32 = arith.constant 0 : i32
    %c0_i32_0 = arith.constant 0 : i32
    %c0_i32_1 = arith.constant 0 : i32
    return %c0_i32, %c0_i32_0 : i32, i32
  }
  func.func @transform_9(%arg0: i32) -> (i32, i32) {
    %c0_i32 = arith.constant 0 : i32
    %c0_i32_0 = arith.constant 0 : i32
    %c0_i32_1 = arith.constant 0 : i32
    return %c0_i32, %c0_i32_0 : i32, i32
  }
  func.func @transform_10(%arg0: i32) -> (i32, i32) {
    %c0_i32 = arith.constant 0 : i32
    %c0_i32_0 = arith.constant 0 : i32
    %c0_i32_1 = arith.constant 0 : i32
    return %c0_i32, %c0_i32_0 : i32, i32
  }
  func.func @transform_11(%arg0: i32) -> (i32, i32) {
    %c0_i32 = arith.constant 0 : i32
    %c0_i32_0 = arith.constant 0 : i32
    %c0_i32_1 = arith.constant 0 : i32
    return %c0_i32, %c0_i32_0 : i32, i32
  }
  func.func @transform_12(%arg0: i32) -> (i32, i32) {
    %c0_i32 = arith.constant 0 : i32
    %c0_i32_0 = arith.constant 0 : i32
    %c0_i32_1 = arith.constant 0 : i32
    return %c0_i32, %c0_i32_0 : i32, i32
  }
  func.func @transform_13(%arg0: i32) -> (i32, i32) {
    %c0_i32 = arith.constant 0 : i32
    %c0_i32_0 = arith.constant 0 : i32
    %c0_i32_1 = arith.constant 0 : i32
    return %c0_i32, %c0_i32_0 : i32, i32
  }
  func.func @transform_14(%arg0: i32) -> (i32, i32) {
    %c0_i32 = arith.constant 0 : i32
    %c0_i32_0 = arith.constant 0 : i32
    %c0_i32_1 = arith.constant 0 : i32
    return %c0_i32, %c0_i32_0 : i32, i32
  }
  func.func @transform_15(%arg0: i32) -> (i32, i32) {
    %c0_i32 = arith.constant 0 : i32
    %c0_i32_0 = arith.constant 0 : i32
    %c0_i32_1 = arith.constant 0 : i32
    return %c0_i32, %c0_i32_0 : i32, i32
  }
  func.func @transform_16(%arg0: i32) -> (i32, i32) {
    %c0_i32 = arith.constant 0 : i32
    %c0_i32_0 = arith.constant 0 : i32
    %c0_i32_1 = arith.constant 0 : i32
    return %c0_i32, %c0_i32_0 : i32, i32
  }
  func.func @transform_17(%arg0: i32) -> (i32, i32, i32) {
    %c0_i32 = arith.constant 0 : i32
    %c0_i32_0 = arith.constant 0 : i32
    %c0_i32_1 = arith.constant 0 : i32
    return %arg0, %c0_i32, %c0_i32_0 : i32, i32, i32
  }
}

module attributes {stable_mosaic.version = 11 : i64} {
  func.func @kernel(%arg0: i32, %arg1: memref<1x16x32xf32, #tpu.memory_space<vmem>>, %arg2: memref<32x32xf32, #tpu.memory_space<vmem>>, %arg3: memref<1x32xf32, #tpu.memory_space<vmem>>, %arg4: memref<32x32xf32, #tpu.memory_space<vmem>>, %arg5: memref<1x32xf32, #tpu.memory_space<vmem>>, %arg6: memref<32x32xf32, #tpu.memory_space<vmem>>, %arg7: memref<32x32xf32, #tpu.memory_space<vmem>>, %arg8: memref<1x32xf32, #tpu.memory_space<vmem>>, %arg9: memref<32x32xf32, #tpu.memory_space<vmem>>, %arg10: memref<1x32xf32, #tpu.memory_space<vmem>>, %arg11: memref<32x32xf32, #tpu.memory_space<vmem>>, %arg12: memref<32x32xf32, #tpu.memory_space<vmem>>, %arg13: memref<1x32xf32, #tpu.memory_space<vmem>>, %arg14: memref<32x32xf32, #tpu.memory_space<vmem>>, %arg15: memref<1x32xf32, #tpu.memory_space<vmem>>, %arg16: memref<32x8xf32, #tpu.memory_space<vmem>>, %arg17: memref<1x8xf32, #tpu.memory_space<vmem>>, %arg18: memref<1x1x8xf32, #tpu.memory_space<vmem>>) attributes {dimension_semantics = [#tpu.dimension_semantics<parallel>], iteration_bounds = array<i64: 2>, scalar_prefetch = 0 : i64, scratch_operands = 0 : i64, tpu.core_type = #tpu.core_type<tc>, window_params = [{transform_indices = @transform_0, window_bounds = array<i64: 1, 16, 32>}, {pipeline_mode = #tpu.pipeline_mode<synchronous>, transform_indices = @transform_1, window_bounds = array<i64: 32, 32>}, {pipeline_mode = #tpu.pipeline_mode<synchronous>, transform_indices = @transform_2, window_bounds = array<i64: 1, 32>}, {pipeline_mode = #tpu.pipeline_mode<synchronous>, transform_indices = @transform_3, window_bounds = array<i64: 32, 32>}, {pipeline_mode = #tpu.pipeline_mode<synchronous>, transform_indices = @transform_4, window_bounds = array<i64: 1, 32>}, {pipeline_mode = #tpu.pipeline_mode<synchronous>, transform_indices = @transform_5, window_bounds = array<i64: 32, 32>}, {pipeline_mode = #tpu.pipeline_mode<synchronous>, transform_indices = @transform_6, window_bounds = array<i64: 32, 32>}, {pipeline_mode = #tpu.pipeline_mode<synchronous>, transform_indices = @transform_7, window_bounds = array<i64: 1, 32>}, {pipeline_mode = #tpu.pipeline_mode<synchronous>, transform_indices = @transform_8, window_bounds = array<i64: 32, 32>}, {pipeline_mode = #tpu.pipeline_mode<synchronous>, transform_indices = @transform_9, window_bounds = array<i64: 1, 32>}, {pipeline_mode = #tpu.pipeline_mode<synchronous>, transform_indices = @transform_10, window_bounds = array<i64: 32, 32>}, {pipeline_mode = #tpu.pipeline_mode<synchronous>, transform_indices = @transform_11, window_bounds = array<i64: 32, 32>}, {pipeline_mode = #tpu.pipeline_mode<synchronous>, transform_indices = @transform_12, window_bounds = array<i64: 1, 32>}, {pipeline_mode = #tpu.pipeline_mode<synchronous>, transform_indices = @transform_13, window_bounds = array<i64: 32, 32>}, {pipeline_mode = #tpu.pipeline_mode<synchronous>, transform_indices = @transform_14, window_bounds = array<i64: 1, 32>}, {pipeline_mode = #tpu.pipeline_mode<synchronous>, transform_indices = @transform_15, window_bounds = array<i64: 32, 8>}, {pipeline_mode = #tpu.pipeline_mode<synchronous>, transform_indices = @transform_16, window_bounds = array<i64: 1, 8>}, {transform_indices = @transform_17, window_bounds = array<i64: 1, 1, 8>}]} {
    %c0 = arith.constant 0 : index
    %c0_0 = arith.constant 0 : index
    %c0_1 = arith.constant 0 : index
    %0 = vector.load %arg1[%c0, %c0_0, %c0_1] : memref<1x16x32xf32, #tpu.memory_space<vmem>>, vector<1x16x32xf32>
    %1 = vector.shape_cast %0 : vector<1x16x32xf32> to vector<16x32xf32>
    %c0_2 = arith.constant 0 : index
    %c0_3 = arith.constant 0 : index
    %2 = vector.load %arg2[%c0_2, %c0_3] : memref<32x32xf32, #tpu.memory_space<vmem>>, vector<32x32xf32>
    %cst = arith.constant dense<0.000000e+00> : vector<16x32xf32>
    %3 = tpu.matmul %1, %2, %cst {dimension_numbers = #tpu.dot_dimension_numbers<[1], [0], [0], [1], [0, 0, 1, 1], [], []>} : vector<16x32xf32>, vector<32x32xf32>, vector<16x32xf32> -> vector<16x32xf32>
    %c0_4 = arith.constant 0 : index
    %c0_5 = arith.constant 0 : index
    %4 = vector.load %arg3[%c0_4, %c0_5] : memref<1x32xf32, #tpu.memory_space<vmem>>, vector<1x32xf32>
    %5 = vector.broadcast %4 : vector<1x32xf32> to vector<16x32xf32>
    %6 = arith.addf %3, %5 : vector<16x32xf32>
    %cst_6 = arith.constant 0.000000e+00 : f32
    %7 = vector.broadcast %cst_6 : f32 to vector<16x32xf32>
    %8 = arith.maximumf %6, %7 : vector<16x32xf32>
    %c0_7 = arith.constant 0 : index
    %c0_8 = arith.constant 0 : index
    %9 = vector.load %arg4[%c0_7, %c0_8] : memref<32x32xf32, #tpu.memory_space<vmem>>, vector<32x32xf32>
    %cst_9 = arith.constant dense<0.000000e+00> : vector<16x32xf32>
    %10 = tpu.matmul %8, %9, %cst_9 {dimension_numbers = #tpu.dot_dimension_numbers<[1], [0], [0], [1], [0, 0, 1, 1], [], []>} : vector<16x32xf32>, vector<32x32xf32>, vector<16x32xf32> -> vector<16x32xf32>
    %c0_10 = arith.constant 0 : index
    %c0_11 = arith.constant 0 : index
    %11 = vector.load %arg5[%c0_10, %c0_11] : memref<1x32xf32, #tpu.memory_space<vmem>>, vector<1x32xf32>
    %12 = vector.broadcast %11 : vector<1x32xf32> to vector<16x32xf32>
    %13 = arith.addf %10, %12 : vector<16x32xf32>
    %cst_12 = arith.constant 0.000000e+00 : f32
    %14 = vector.broadcast %cst_12 : f32 to vector<16x32xf32>
    %15 = arith.maximumf %13, %14 : vector<16x32xf32>
    %16 = vector.shape_cast %15 : vector<16x32xf32> to vector<1x16x32xf32>
    %17 = vector.extract_strided_slice %16 {offsets = [0, 0, 0], sizes = [1, 8, 32], strides = [1, 1, 1]} : vector<1x16x32xf32> to vector<1x8x32xf32>
    %18 = vector.extract_strided_slice %16 {offsets = [0, 8, 0], sizes = [1, 8, 32], strides = [1, 1, 1]} : vector<1x16x32xf32> to vector<1x8x32xf32>
    "tpu.trace_start"() <{level = 10 : i32, message = "bqd,bkd->bqk"}> : () -> ()
    %cst_13 = arith.constant dense<0.000000e+00> : vector<1x8x8xf32>
    %19 = tpu.matmul %17, %18, %cst_13 {dimension_numbers = #tpu.dot_dimension_numbers<[2], [2], [1], [1], [0, 0, 0, 1, 1, 1], [0], [0]>} : vector<1x8x32xf32>, vector<1x8x32xf32>, vector<1x8x8xf32> -> vector<1x8x8xf32>
    "tpu.trace_stop"() : () -> ()
    %cst_14 = arith.constant dense<0xFF800000> : vector<1x8xf32>
    %20 = vector.multi_reduction <maximumf>, %19, %cst_14 [2] : vector<1x8x8xf32> to vector<1x8xf32>
    %21 = vector.shape_cast %20 : vector<1x8xf32> to vector<1x8x1xf32>
    %22 = vector.broadcast %21 : vector<1x8x1xf32> to vector<1x8x8xf32>
    %23 = arith.subf %19, %22 : vector<1x8x8xf32>
    %24 = math.exp %23 : vector<1x8x8xf32>
    %cst_15 = arith.constant dense<0.000000e+00> : vector<1x8xf32>
    %25 = vector.multi_reduction <add>, %24, %cst_15 [2] : vector<1x8x8xf32> to vector<1x8xf32>
    %26 = vector.shape_cast %25 : vector<1x8xf32> to vector<1x8x1xf32>
    %27 = vector.broadcast %26 : vector<1x8x1xf32> to vector<1x8x8xf32>
    %28 = arith.divf %24, %27 : vector<1x8x8xf32>
    %cst_16 = arith.constant dense<0xFF800000> : vector<1x8xf32>
    %29 = vector.multi_reduction <maximumf>, %19, %cst_16 [1] : vector<1x8x8xf32> to vector<1x8xf32>
    %30 = vector.shape_cast %29 : vector<1x8xf32> to vector<1x1x8xf32>
    %31 = vector.broadcast %30 : vector<1x1x8xf32> to vector<1x8x8xf32>
    %32 = arith.subf %19, %31 : vector<1x8x8xf32>
    %33 = math.exp %32 : vector<1x8x8xf32>
    %cst_17 = arith.constant dense<0.000000e+00> : vector<1x8xf32>
    %34 = vector.multi_reduction <add>, %33, %cst_17 [1] : vector<1x8x8xf32> to vector<1x8xf32>
    %35 = vector.shape_cast %34 : vector<1x8xf32> to vector<1x1x8xf32>
    %36 = vector.broadcast %35 : vector<1x1x8xf32> to vector<1x8x8xf32>
    %37 = arith.divf %33, %36 : vector<1x8x8xf32>
    "tpu.trace_start"() <{level = 10 : i32, message = "bqk,bkd->bqd"}> : () -> ()
    %cst_18 = arith.constant dense<0.000000e+00> : vector<1x8x32xf32>
    %38 = tpu.matmul %28, %18, %cst_18 {dimension_numbers = #tpu.dot_dimension_numbers<[2], [1], [1], [2], [0, 0, 0, 1, 1, 2], [0], [0]>} : vector<1x8x8xf32>, vector<1x8x32xf32>, vector<1x8x32xf32> -> vector<1x8x32xf32>
    "tpu.trace_stop"() : () -> ()
    "tpu.trace_start"() <{level = 10 : i32, message = "bqk,bqd->bkd"}> : () -> ()
    %cst_19 = arith.constant dense<0.000000e+00> : vector<1x8x32xf32>
    %39 = tpu.matmul %37, %17, %cst_19 {dimension_numbers = #tpu.dot_dimension_numbers<[1], [1], [2], [2], [0, 0, 0, 2, 1, 2], [0], [0]>} : vector<1x8x8xf32>, vector<1x8x32xf32>, vector<1x8x32xf32> -> vector<1x8x32xf32>
    "tpu.trace_stop"() : () -> ()
    %40 = tpu.concatenate %38, %39 in 1 : vector<1x8x32xf32>, vector<1x8x32xf32> -> vector<1x16x32xf32>
    %41 = vector.shape_cast %40 : vector<1x16x32xf32> to vector<16x32xf32>
    %c0_20 = arith.constant 0 : index
    %c0_21 = arith.constant 0 : index
    %42 = vector.load %arg6[%c0_20, %c0_21] : memref<32x32xf32, #tpu.memory_space<vmem>>, vector<32x32xf32>
    %cst_22 = arith.constant dense<0.000000e+00> : vector<16x32xf32>
    %43 = tpu.matmul %15, %42, %cst_22 {dimension_numbers = #tpu.dot_dimension_numbers<[1], [0], [0], [1], [0, 0, 1, 1], [], []>} : vector<16x32xf32>, vector<32x32xf32>, vector<16x32xf32> -> vector<16x32xf32>
    %c0_23 = arith.constant 0 : index
    %c0_24 = arith.constant 0 : index
    %44 = vector.load %arg7[%c0_23, %c0_24] : memref<32x32xf32, #tpu.memory_space<vmem>>, vector<32x32xf32>
    %cst_25 = arith.constant dense<0.000000e+00> : vector<16x32xf32>
    %45 = tpu.matmul %41, %44, %cst_25 {dimension_numbers = #tpu.dot_dimension_numbers<[1], [0], [0], [1], [0, 0, 1, 1], [], []>} : vector<16x32xf32>, vector<32x32xf32>, vector<16x32xf32> -> vector<16x32xf32>
    %46 = arith.addf %43, %45 : vector<16x32xf32>
    %c0_26 = arith.constant 0 : index
    %c0_27 = arith.constant 0 : index
    %47 = vector.load %arg8[%c0_26, %c0_27] : memref<1x32xf32, #tpu.memory_space<vmem>>, vector<1x32xf32>
    %48 = vector.broadcast %47 : vector<1x32xf32> to vector<16x32xf32>
    %49 = arith.addf %46, %48 : vector<16x32xf32>
    %cst_28 = arith.constant 0.000000e+00 : f32
    %50 = vector.broadcast %cst_28 : f32 to vector<16x32xf32>
    %51 = arith.maximumf %49, %50 : vector<16x32xf32>
    %c0_29 = arith.constant 0 : index
    %c0_30 = arith.constant 0 : index
    %52 = vector.load %arg9[%c0_29, %c0_30] : memref<32x32xf32, #tpu.memory_space<vmem>>, vector<32x32xf32>
    %cst_31 = arith.constant dense<0.000000e+00> : vector<16x32xf32>
    %53 = tpu.matmul %51, %52, %cst_31 {dimension_numbers = #tpu.dot_dimension_numbers<[1], [0], [0], [1], [0, 0, 1, 1], [], []>} : vector<16x32xf32>, vector<32x32xf32>, vector<16x32xf32> -> vector<16x32xf32>
    %c0_32 = arith.constant 0 : index
    %c0_33 = arith.constant 0 : index
    %54 = vector.load %arg10[%c0_32, %c0_33] : memref<1x32xf32, #tpu.memory_space<vmem>>, vector<1x32xf32>
    %55 = vector.broadcast %54 : vector<1x32xf32> to vector<16x32xf32>
    %56 = arith.addf %53, %55 : vector<16x32xf32>
    %cst_34 = arith.constant 0.000000e+00 : f32
    %57 = vector.broadcast %cst_34 : f32 to vector<16x32xf32>
    %58 = arith.maximumf %56, %57 : vector<16x32xf32>
    %59 = vector.shape_cast %58 : vector<16x32xf32> to vector<1x16x32xf32>
    %60 = vector.extract_strided_slice %59 {offsets = [0, 0, 0], sizes = [1, 8, 32], strides = [1, 1, 1]} : vector<1x16x32xf32> to vector<1x8x32xf32>
    %cst_35 = arith.constant dense<0.000000e+00> : vector<1x32xf32>
    %61 = vector.multi_reduction <add>, %60, %cst_35 [1] : vector<1x8x32xf32> to vector<1x32xf32>
    %62 = vector.extract_strided_slice %59 {offsets = [0, 8, 0], sizes = [1, 8, 32], strides = [1, 1, 1]} : vector<1x16x32xf32> to vector<1x8x32xf32>
    %cst_36 = arith.constant dense<0.000000e+00> : vector<1x32xf32>
    %63 = vector.multi_reduction <add>, %62, %cst_36 [1] : vector<1x8x32xf32> to vector<1x32xf32>
    %c0_37 = arith.constant 0 : index
    %c0_38 = arith.constant 0 : index
    %64 = vector.load %arg11[%c0_37, %c0_38] : memref<32x32xf32, #tpu.memory_space<vmem>>, vector<32x32xf32>
    %cst_39 = arith.constant dense<0.000000e+00> : vector<1x32xf32>
    %65 = tpu.matmul %61, %64, %cst_39 {dimension_numbers = #tpu.dot_dimension_numbers<[1], [0], [0], [1], [0, 0, 1, 1], [], []>} : vector<1x32xf32>, vector<32x32xf32>, vector<1x32xf32> -> vector<1x32xf32>
    %c0_40 = arith.constant 0 : index
    %c0_41 = arith.constant 0 : index
    %66 = vector.load %arg12[%c0_40, %c0_41] : memref<32x32xf32, #tpu.memory_space<vmem>>, vector<32x32xf32>
    %cst_42 = arith.constant dense<0.000000e+00> : vector<1x32xf32>
    %67 = tpu.matmul %63, %66, %cst_42 {dimension_numbers = #tpu.dot_dimension_numbers<[1], [0], [0], [1], [0, 0, 1, 1], [], []>} : vector<1x32xf32>, vector<32x32xf32>, vector<1x32xf32> -> vector<1x32xf32>
    %68 = arith.addf %65, %67 : vector<1x32xf32>
    %c0_43 = arith.constant 0 : index
    %c0_44 = arith.constant 0 : index
    %69 = vector.load %arg13[%c0_43, %c0_44] : memref<1x32xf32, #tpu.memory_space<vmem>>, vector<1x32xf32>
    %70 = arith.addf %68, %69 : vector<1x32xf32>
    %cst_45 = arith.constant 0.000000e+00 : f32
    %71 = vector.broadcast %cst_45 : f32 to vector<1x32xf32>
    %72 = arith.maximumf %70, %71 : vector<1x32xf32>
    %c0_46 = arith.constant 0 : index
    %c0_47 = arith.constant 0 : index
    %73 = vector.load %arg14[%c0_46, %c0_47] : memref<32x32xf32, #tpu.memory_space<vmem>>, vector<32x32xf32>
    %cst_48 = arith.constant dense<0.000000e+00> : vector<1x32xf32>
    %74 = tpu.matmul %72, %73, %cst_48 {dimension_numbers = #tpu.dot_dimension_numbers<[1], [0], [0], [1], [0, 0, 1, 1], [], []>} : vector<1x32xf32>, vector<32x32xf32>, vector<1x32xf32> -> vector<1x32xf32>
    %c0_49 = arith.constant 0 : index
    %c0_50 = arith.constant 0 : index
    %75 = vector.load %arg15[%c0_49, %c0_50] : memref<1x32xf32, #tpu.memory_space<vmem>>, vector<1x32xf32>
    %76 = arith.addf %74, %75 : vector<1x32xf32>
    %cst_51 = arith.constant 0.000000e+00 : f32
    %77 = vector.broadcast %cst_51 : f32 to vector<1x32xf32>
    %78 = arith.maximumf %76, %77 : vector<1x32xf32>
    %c0_52 = arith.constant 0 : index
    %c0_53 = arith.constant 0 : index
    %79 = vector.load %arg16[%c0_52, %c0_53] : memref<32x8xf32, #tpu.memory_space<vmem>>, vector<32x8xf32>
    %cst_54 = arith.constant dense<0.000000e+00> : vector<1x8xf32>
    %80 = tpu.matmul %78, %79, %cst_54 {dimension_numbers = #tpu.dot_dimension_numbers<[1], [0], [0], [1], [0, 0, 1, 1], [], []>} : vector<1x32xf32>, vector<32x8xf32>, vector<1x8xf32> -> vector<1x8xf32>
    %c0_55 = arith.constant 0 : index
    %c0_56 = arith.constant 0 : index
    %81 = vector.load %arg17[%c0_55, %c0_56] : memref<1x8xf32, #tpu.memory_space<vmem>>, vector<1x8xf32>
    %82 = arith.addf %80, %81 : vector<1x8xf32>
    %cst_57 = arith.constant dense<0xFF800000> : vector<1xf32>
    %83 = vector.multi_reduction <maximumf>, %82, %cst_57 [1] : vector<1x8xf32> to vector<1xf32>
    %84 = vector.shape_cast %83 : vector<1xf32> to vector<1x1xf32>
    %85 = vector.broadcast %84 : vector<1x1xf32> to vector<1x8xf32>
    %86 = arith.subf %82, %85 : vector<1x8xf32>
    %87 = math.exp %86 : vector<1x8xf32>
    %cst_58 = arith.constant dense<0.000000e+00> : vector<1xf32>
    %88 = vector.multi_reduction <add>, %87, %cst_58 [1] : vector<1x8xf32> to vector<1xf32>
    %89 = vector.shape_cast %88 : vector<1xf32> to vector<1x1xf32>
    %90 = math.log %89 : vector<1x1xf32>
    %91 = vector.broadcast %90 : vector<1x1xf32> to vector<1x8xf32>
    %92 = arith.subf %86, %91 : vector<1x8xf32>
    %93 = vector.shape_cast %92 : vector<1x8xf32> to vector<1x1x8xf32>
    %c0_59 = arith.constant 0 : index
    %c0_60 = arith.constant 0 : index
    %c0_61 = arith.constant 0 : index
    %94 = vector.load %arg18[%c0_59, %c0_60, %c0_61] : memref<1x1x8xf32, #tpu.memory_space<vmem>>, vector<1x1x8xf32>
    tpu.vector_store %arg18[%c0_59, %c0_60, %c0_61], %93 {strides = array<i32>} : memref<1x1x8xf32, #tpu.memory_space<vmem>>, vector<1x1x8xf32>,
    return
  }
  func.func @transform_0(%arg0: i32) -> (i32, i32, i32) {
    %c0_i32 = arith.constant 0 : i32
    %c0_i32_0 = arith.constant 0 : i32
    %c0_i32_1 = arith.constant 0 : i32
    return %arg0, %c0_i32, %c0_i32_0 : i32, i32, i32
  }
  func.func @transform_1(%arg0: i32) -> (i32, i32) {
    %c0_i32 = arith.constant 0 : i32
    %c0_i32_0 = arith.constant 0 : i32
    %c0_i32_1 = arith.constant 0 : i32
    return %c0_i32, %c0_i32_0 : i32, i32
  }
  func.func @transform_2(%arg0: i32) -> (i32, i32) {
    %c0_i32 = arith.constant 0 : i32
    %c0_i32_0 = arith.constant 0 : i32
    %c0_i32_1 = arith.constant 0 : i32
    return %c0_i32, %c0_i32_0 : i32, i32
  }
  func.func @transform_3(%arg0: i32) -> (i32, i32) {
    %c0_i32 = arith.constant 0 : i32
    %c0_i32_0 = arith.constant 0 : i32
    %c0_i32_1 = arith.constant 0 : i32
    return %c0_i32, %c0_i32_0 : i32, i32
  }
  func.func @transform_4(%arg0: i32) -> (i32, i32) {
    %c0_i32 = arith.constant 0 : i32
    %c0_i32_0 = arith.constant 0 : i32
    %c0_i32_1 = arith.constant 0 : i32
    return %c0_i32, %c0_i32_0 : i32, i32
  }
  func.func @transform_5(%arg0: i32) -> (i32, i32) {
    %c0_i32 = arith.constant 0 : i32
    %c0_i32_0 = arith.constant 0 : i32
    %c0_i32_1 = arith.constant 0 : i32
    return %c0_i32, %c0_i32_0 : i32, i32
  }
  func.func @transform_6(%arg0: i32) -> (i32, i32) {
    %c0_i32 = arith.constant 0 : i32
    %c0_i32_0 = arith.constant 0 : i32
    %c0_i32_1 = arith.constant 0 : i32
    return %c0_i32, %c0_i32_0 : i32, i32
  }
  func.func @transform_7(%arg0: i32) -> (i32, i32) {
    %c0_i32 = arith.constant 0 : i32
    %c0_i32_0 = arith.constant 0 : i32
    %c0_i32_1 = arith.constant 0 : i32
    return %c0_i32, %c0_i32_0 : i32, i32
  }
  func.func @transform_8(%arg0: i32) -> (i32, i32) {
    %c0_i32 = arith.constant 0 : i32
    %c0_i32_0 = arith.constant 0 : i32
    %c0_i32_1 = arith.constant 0 : i32
    return %c0_i32, %c0_i32_0 : i32, i32
  }
  func.func @transform_9(%arg0: i32) -> (i32, i32) {
    %c0_i32 = arith.constant 0 : i32
    %c0_i32_0 = arith.constant 0 : i32
    %c0_i32_1 = arith.constant 0 : i32
    return %c0_i32, %c0_i32_0 : i32, i32
  }
  func.func @transform_10(%arg0: i32) -> (i32, i32) {
    %c0_i32 = arith.constant 0 : i32
    %c0_i32_0 = arith.constant 0 : i32
    %c0_i32_1 = arith.constant 0 : i32
    return %c0_i32, %c0_i32_0 : i32, i32
  }
  func.func @transform_11(%arg0: i32) -> (i32, i32) {
    %c0_i32 = arith.constant 0 : i32
    %c0_i32_0 = arith.constant 0 : i32
    %c0_i32_1 = arith.constant 0 : i32
    return %c0_i32, %c0_i32_0 : i32, i32
  }
  func.func @transform_12(%arg0: i32) -> (i32, i32) {
    %c0_i32 = arith.constant 0 : i32
    %c0_i32_0 = arith.constant 0 : i32
    %c0_i32_1 = arith.constant 0 : i32
    return %c0_i32, %c0_i32_0 : i32, i32
  }
  func.func @transform_13(%arg0: i32) -> (i32, i32) {
    %c0_i32 = arith.constant 0 : i32
    %c0_i32_0 = arith.constant 0 : i32
    %c0_i32_1 = arith.constant 0 : i32
    return %c0_i32, %c0_i32_0 : i32, i32
  }
  func.func @transform_14(%arg0: i32) -> (i32, i32) {
    %c0_i32 = arith.constant 0 : i32
    %c0_i32_0 = arith.constant 0 : i32
    %c0_i32_1 = arith.constant 0 : i32
    return %c0_i32, %c0_i32_0 : i32, i32
  }
  func.func @transform_15(%arg0: i32) -> (i32, i32) {
    %c0_i32 = arith.constant 0 : i32
    %c0_i32_0 = arith.constant 0 : i32
    %c0_i32_1 = arith.constant 0 : i32
    return %c0_i32, %c0_i32_0 : i32, i32
  }
  func.func @transform_16(%arg0: i32) -> (i32, i32) {
    %c0_i32 = arith.constant 0 : i32
    %c0_i32_0 = arith.constant 0 : i32
    %c0_i32_1 = arith.constant 0 : i32
    return %c0_i32, %c0_i32_0 : i32, i32
  }
  func.func @transform_17(%arg0: i32) -> (i32, i32, i32) {
    %c0_i32 = arith.constant 0 : i32
    %c0_i32_0 = arith.constant 0 : i32
    %c0_i32_1 = arith.constant 0 : i32
    return %arg0, %c0_i32, %c0_i32_0 : i32, i32, i32
  }
}

</mosaic_0001>

<bundles_post_ra>
// kernel: tpu_custom_call.1
= control target key start
LH: loop header
LB: loop body
LE: loop exit
PB: predicated region body
PF: predicated region fallthrough
CT: control target
= control target key end

     0   :  { %s2175_s0 = inlined_call_operand.vmem [shape: f32[2,16,32], index: 0, kind: input, shape index: {}]   ;;  %s2176_s1 = inlined_call_operand.hbm [shape: f32[32,32], index: 1, kind: input, shape index: {}]   ;;  %s2177_s2 = inlined_call_operand.vmem [shape: f32[1,32], index: 2, kind: input, shape index: {}]   ;;  %s2178_s3 = inlined_call_operand.hbm [shape: f32[32,32], index: 3, kind: input, shape index: {}]   ;;  %s2179_s4 = inlined_call_operand.vmem [shape: f32[1,32], index: 4, kind: input, shape index: {}]   ;;  %s2180_s5 = inlined_call_operand.hbm [shape: f32[32,32], index: 5, kind: input, shape index: {}]   ;;  %s2181_s6 = inlined_call_operand.hbm [shape: f32[32,32], index: 6, kind: input, shape index: {}]   ;;  %s2182_s7 = inlined_call_operand.vmem [shape: f32[1,32], index: 7, kind: input, shape index: {}]   ;;  %s2183_s8 = inlined_call_operand.hbm [shape: f32[32,32], index: 8, kind: input, shape index: {}]   ;;  %s2184_s9 = inlined_call_operand.vmem [shape: f32[1,32], index: 9, kind: input, shape index: {}]   ;;  %s2185_s10 = inlined_call_operand.hbm [shape: f32[32,32], index: 10, kind: input, shape index: {}]   ;;  %s2186_s11 = inlined_call_operand.hbm [shape: f32[32,32], index: 11, kind: input, shape index: {}]   ;;  %s2187_s12 = inlined_call_operand.vmem [shape: f32[1,32], index: 12, kind: input, shape index: {}]   ;;  %s2188_s13 = inlined_call_operand.hbm [shape: f32[32,32], index: 13, kind: input, shape index: {}]   ;;  %s2189_s14 = inlined_call_operand.vmem [shape: f32[1,32], index: 14, kind: input, shape index: {}]   ;;  %s2190_s15 = inlined_call_operand.vmem [shape: f32[32,8], index: 15, kind: input, shape index: {}]   ;;  %s2191_s16 = inlined_call_operand.vmem [shape: f32[1,8], index: 16, kind: input, shape index: {}]   ;;  %s2192_s17 = inlined_call_operand.hbm [shape: f32[2,1,8], index: 17, kind: output, shape index: {}]  }
   0x1   :  { %2203 = sst [smem:[#allocation31_spill]] %s2175_s0 }
   0x2   :  { %2204 = sst [smem:[#allocation32_spill]] %s2176_s1 }
   0x3   :  { %2205 = sst [smem:[#allocation33_spill]] %s2178_s3 }
   0x4   :  { %2206 = sst [smem:[#allocation34_spill]] %s2181_s6 }
   0x5   :  { %2207 = sst [smem:[#allocation35_spill]] %s2192_s17 }
   0x6   :  { %22 = vsyncpa [#allocation3], 0 }
   0x7   :  { %23 = vsyncpa [#allocation6], 0 }
   0x8   :  { %24 = vsyncpa [#allocation9], 0 }
   0x9   :  { %25 = vsyncpa [#allocation12], 0 }
   0xa   :  { %26 = vsyncpa [#allocation15], 0 }
   0xb   :  { %27 = vsyncpa [#allocation4], 0 }
   0xc   :  { %29 = vsyncpa [#allocation4 + $0x1], 0  ;;  %s1922_s24 = smov 0   ;;  %s1924_s25 = smov 0  }
   0xd   :  { %s1926_s26 = smov 0   ;;  %s1928_s27 = smov 0  }
   0xe LB: > { %2208 = sst [smem:[#allocation23_spill]] %s1808_s24  ;;  %s1943_s28 = sadd.s32 4294967295, %s1820_s27   ;;  %s1820_s27 = sphi %s1928_s27, %s2230_s27   ;;  %s1816_s26 = sphi %s1926_s26, %s2233_s26   ;;  %s1812_s25 = sphi %s1924_s25, %s2232_s25   ;;  %s1808_s24 = sphi %s1922_s24, %s2231_s24  }
   0xf   : > { %2209 = sst [smem:[#allocation24_spill]] %s1812_s25  ;;  %s1316_s29 = sadd.s32 4294967294, %s1820_s27  }
  0x10   : > { %2210 = sst [smem:[#allocation25_spill]] %s1816_s26  ;;  %s1947_s0 = sadd.s32 1, %s1820_s27  }
  0x11   : > { %2211 = sst [smem:[#allocation26_spill]] %s1820_s27  ;;  %s404_s30 = sadd.s32 1, %s1816_s26 }
  0x12   : > { %2212 = sst [smem:[#allocation27_spill]] %s1947_s0  ;;  %s401_s18 = ssub.s32 %s1820_s27, %s1947_s0 }
  0x13   : > { %p414_p0 = scmp.ne.s32.totalorder %s1816_s26, %s1812_s25  ;;  %p402_p1 = scmp.eq.s32.totalorder %s401_s18, 0 }
  0x14   : > { %p415_p2 = scmp.eq.s32.totalorder %s1943_s28, 1  ;;  %p420_p3 = scmp.ne.s32.totalorder %s1812_s25, %s1808_s24 }
  0x15   : > { %p421_p4 = scmp.eq.s32.totalorder %s1316_s29, 1  ;;  %p1317_p7 = scmp.ge.s32.totalorder %s1820_s27, 1 }
  0x16   : > { %s1958_s19 = scalar_select %p402_p1, %s1816_s26, %s404_s30  }
  0x17   : > { %p1960_p5 = por %p415_p2, %p414_p0  ;;  %p1964_p6 = por %p421_p4, %p420_p3 }
  0x18   : > { %2213 = sst [smem:[#allocation28_spill]] %s1958_s19  ;;  %p428_p8 = scmp.lt.s32.totalorder %s1820_s27, 3 }
  0x19   : > { %s2214_s1 = scalar_select %p1960_p5, 1, 0 }
  0x1a   : > { %s2216_s20 = scalar_select %p1964_p6, 1, 0 }
  0x1b   : > { %2215 = sst [smem:[#allocation29_spill]] %s2214_s1  ;;  %p1422_p9 = scmp.eq.s32.totalorder %s1943_s28, 0 }
  0x1c   : > { %2217 = sst [smem:[#allocation30_spill]] %s2216_s20  ;;  %p1971_p10 = pnand %p1317_p7, %p428_p8 }
  0x1d   : > { %s2219_s3 = sld [smem:[#allocation33_spill]]  ;;  %s1822_s0 = smov [#allocation5]  }
  0x1e   : > { %p1393_p11 = pneg %p1971_p10  ;;  %s2220_s6 = sld [smem:[#allocation34_spill]] }
  0x1f   : > { %s458_s20 = sshll.u32 %s1822_s0, 4  ;;  %s1823_s22 = smov 128   ;;  %s459_s20 = int_to_ptr.vmem [resolvable:$true] %s458_s20 }
  0x20   : > { %p1985_p12 = pnand %p1422_p9, %p1393_p11  ;;  %s1824_s23 = smov 8  }
  0x21   : > { %s1825_s30 = smov [#allocation8]   ;;  %s521_s24 = sshll.u32 %s2185_s10, 4  ;;  %s522_s24 = int_to_ptr.hbm [resolvable:$true] %s521_s24 }
  0x22   : > { %s489_s18 = sshll.u32 %s1825_s30, 4  ;;  %s2222_s1 = sld [smem:[#allocation32_spill]]  ;;  %s490_s18 = int_to_ptr.vmem [resolvable:$true] %s489_s18 }
  0x23   : > { %s456_s29 = sshll.u32 %s2219_s3, 4  ;;  %s1826_s25 = smov [#allocation11]   ;;  %s457_s29 = int_to_ptr.hbm [resolvable:$true] %s456_s29 }
  0x24   : > { %s487_s19 = sshll.u32 %s2220_s6, 4  ;;  %s1827_s3 = smov [#allocation2]   ;;  %s488_s19 = int_to_ptr.hbm [resolvable:$true] %s487_s19 }
  0x25   : > { %1399 = dma.hbm_to_vmem [thread:$0]  (!%p1985_p12), %s457_s29, 512, %s459_s20, [#allocation6], %s1823_s22, %s1823_s22, %s1824_s23  }
  0x26   : > { %1405 = dma.hbm_to_vmem [thread:$0]  (!%p1985_p12), %s488_s19, 512, %s490_s18, [#allocation9], %s1823_s22, %s1823_s22, %s1824_s23  }
  0x27   : > { %s523_s20 = sshll.u32 %s1826_s25, 4  ;;  %s441_s6 = sshll.u32 %s1827_s3, 4  ;;  %s524_s20 = int_to_ptr.vmem [resolvable:$true] %s523_s20  ;;  %s442_s6 = int_to_ptr.vmem [resolvable:$true] %s441_s6 }
  0x28   : > { %s439_s17 = sshll.u32 %s2222_s1, 4  ;;  %s473_s19 = sshll.u32 %s2180_s5, 4  ;;  %s440_s17 = int_to_ptr.hbm [resolvable:$true] %s439_s17  ;;  %s474_s19 = int_to_ptr.hbm [resolvable:$true] %s473_s19 }
  0x29   : > { %1411 = dma.hbm_to_vmem [thread:$0]  (!%p1985_p12), %s522_s24, 512, %s524_s20, [#allocation12], %s1823_s22, %s1823_s22, %s1824_s23  }
  0x2a   : > { %1396 = dma.hbm_to_vmem [thread:$0]  (!%p1985_p12), %s440_s17, 512, %s442_s6, [#allocation3], %s1823_s22, %s1823_s22, %s1824_s23  }
  0x2b   : > { %s504_s1 = sshll.u32 %s2183_s8, 4  ;;  %s1828_s18 = smov [#allocation7]   ;;  %s505_s1 = int_to_ptr.hbm [resolvable:$true] %s504_s1 }
  0x2c   : > { %s475_s24 = sshll.u32 %s1828_s18, 4  ;;  %s1829_s0 = smov [#allocation10]   ;;  %s476_s24 = int_to_ptr.vmem [resolvable:$true] %s475_s24 }
  0x2d   : > { %1402 = dma.hbm_to_vmem [thread:$0]  (!%p1985_p12), %s474_s19, 512, %s476_s24, [#allocation6], %s1823_s22, %s1823_s22, %s1824_s23  }
  0x2e   : > { %s506_s20 = sshll.u32 %s1829_s0, 4  ;;  %s535_s17 = sshll.u32 %s2186_s11, 4  ;;  %s507_s20 = int_to_ptr.vmem [resolvable:$true] %s506_s20  ;;  %s536_s17 = int_to_ptr.hbm [resolvable:$true] %s535_s17 }
  0x2f   : > { %1408 = dma.hbm_to_vmem [thread:$0]  (!%p1985_p12), %s505_s1, 512, %s507_s20, [#allocation9], %s1823_s22, %s1823_s22, %s1824_s23  }
  0x30   : > { %s552_s25 = sshll.u32 %s2188_s13, 4  ;;  %s1830_s27 = smov [#allocation13]   ;;  %s553_s25 = int_to_ptr.hbm [resolvable:$true] %s552_s25 }
  0x31   : > { %s537_s19 = sshll.u32 %s1830_s27, 4  ;;  %s1831_s18 = smov [#allocation14]   ;;  %s538_s19 = int_to_ptr.vmem [resolvable:$true] %s537_s19 }
  0x32   : > { %1414 = dma.hbm_to_vmem [thread:$0]  (!%p1985_p12), %s536_s17, 512, %s538_s19, [#allocation12], %s1823_s22, %s1823_s22, %s1824_s23  }
  0x33   : > { %s554_s24 = sshll.u32 %s1831_s18, 4  ;;  %587 = sbr.rel (%p1971_p10) target bundleno = 1816 (0x718), region = 88  ;;  %s555_s24 = int_to_ptr.vmem [resolvable:$true] %s554_s24 }
  0x34   : > { %1417 = dma.hbm_to_vmem [thread:$0]  (!%p1985_p12), %s553_s25, 512, %s555_s24, [#allocation15], %s1823_s22, %s1823_s22, %s1824_s23  }
  0x38   : > { %1783 = dma.done.wait (%p1422_p9), [#allocation3], 512  }
  0x39   : > { %1785 = vsyncadd (%p1422_p9), [#allocation3], 4294966784 }
  0x3a   : > { %1787 = dma.done.wait (%p1422_p9), [#allocation6], 1024  }
  0x3b   : > { %1789 = vsyncadd (%p1422_p9), [#allocation6], 4294966272 }
  0x3c   : > { %1791 = dma.done.wait (%p1422_p9), [#allocation9], 1024  }
  0x3d   : > { %1793 = vsyncadd (%p1422_p9), [#allocation9], 4294966272 }
  0x3e   : > { %1795 = dma.done.wait (%p1422_p9), [#allocation12], 1024  }
  0x3f   : > { %1797 = vsyncadd (%p1422_p9), [#allocation12], 4294966272 }
  0x40   : > { %1799 = dma.done.wait (%p1422_p9), [#allocation15], 512  }
  0x41   : > { %1801 = vsyncadd (%p1422_p9), [#allocation15], 4294966784  ;;  %p674_p13 = scmp.lt.s32.totalorder %s1943_s28, 1  ;;  %v684_v0 = vld [vmem:[#allocation2 + $0x18] sm:$0xff]  ;;  %v683_v1 = vld [vmem:[#allocation2 + $0x10] sm:$0xff]  ;;  %s2223_s1 = sld [smem:[#allocation31_spill]] }
  0x42   : > { %708 = vmatpush.msra.mxu0 %v684_v0  ;;  %v682_v2 = vld [vmem:[#allocation2 + $0x8] sm:$0xff]  ;;  %v724_v3 = vld [vmem:[#allocation5 + $0x18] sm:$0xff]  ;;  %v681_v4 = vld [vmem:[#allocation2] sm:$0xff]  ;;  %vm689_vm0 = vcmask 261120   ;;  %vm786_vm1 = vcmask 64512   ;;  %s2224_s30 = sld [smem:[#allocation24_spill]] }
  0x43   : > { %s675_s26 = scalar_select %p674_p13, %s1943_s28, 1  ;;  %747 = vmatpush.msra.mxu1 %v724_v3  ;;  %v723_v7 = vld [vmem:[#allocation5 + $0x10] sm:$0xff]  ;;  %v722_v8 = vld [vmem:[#allocation5 + $0x8] sm:$0xff]  ;;  %v721_v9 = vld [vmem:[#allocation5] sm:$0xff]  ;;  %vm1155_vm10 = vcmask 57344  }
  0x44   : > { %709 = vmatpush.msra.mxu0 %v683_v1  ;;  %v1482_v10 = vld [vmem:[%s2177_s2] ss:$0 sm:$0xff]  ;;  %v927_v1 = vld [vmem:[#allocation8 + $0x18] sm:$0xff]  ;;  %s2225_s18 = sld [smem:[#allocation35_spill]] }
  0x45   : > { %s1358_s21 = sshll.u32 %s675_s26, 4  ;;  %748 = vmatpush.msra.mxu1 %v723_v7  ;;  %v1483_v18 = vld [vmem:[%s2179_s4] ss:$0 sm:$0xff] }
  0x46   : > { %710 = vmatpush.msra.mxu0 %v682_v2  ;;  %v926_v2 = vld [vmem:[#allocation8 + $0x10] sm:$0xff]  ;;  %v924_v7 = vld [vmem:[#allocation8] sm:$0xff] }
  0x47   : > { %s678_s0 = scalar_lea.vmem %s2223_s1, %s1358_s21  ;;  %749 = vmatpush.msra.mxu1 %v722_v8 }
  0x48   : > { %v679_v5 = vld [vmem:[%s678_s0] sm:$0xff]  ;;  %711 = vmatpush.msra.mxu0 %v681_v4  ;;  %v680_v6 = vld [vmem:[%s678_s0 + $0x8] sm:$0xff]  ;;  %s672_s25 = sand.u32 1, %s2224_s30  }
  0x49   : > { %1338 = vmatmul.msk.f32.vlgmr.msra.gmra.mxu0 %vm689_vm0, %v679_v5  ;;  %750 = vmatpush.msra.mxu1 %v721_v9  ;;  %v925_v4 = vld [vmem:[#allocation8 + $0x8] sm:$0xff]  ;;  %s673_s21 = scalar_lea.vmem [#allocation16], %s672_s25  ;;  %s1170_s1 = scalar_lea.sflag [#allocation4], %s672_s25 }
  0x4a   : > { %s1178_s26 = scalar_lea.hbm %s2225_s18, %s1943_s28  ;;  %s1180_s22 = sshll.u32 %s673_s21, 4  ;;  %s1181_s22 = int_to_ptr.vmem [resolvable:$true] %s1180_s22 }
  0x4b   : > { %s1182_s23 = sshll.u32 %s1178_s26, 4  ;;  %s1758_s29 = scalar_lea.hbm %s2225_s18, 2  ;;  %s1183_s23 = int_to_ptr.hbm [resolvable:$true] %s1182_s23 }
  0x4c   : > { %s1752_s0 = sshra.s32 %s1183_s23, 4  ;;  %s1753_s0 = int_to_ptr.hbm [resolvable:$true] %s1752_s0 }
  0x4d   : > { %s1754_s20 = scalar_lea.hbm %s1753_s0, 1  ;;  %p1759_p3 = scmp.lt.s32.totalorder %s1753_s0, %s2225_s18 }
  0x4e   : > { %p1755_p0 = scmp.ne.s32.totalorder %s1753_s0, %s1754_s20  ;;  %p1760_p4 = scmp.lt.s32.totalorder %s1758_s29, %s1754_s20 }
  0x50   : > { %p1756_p1 = pnand %p1755_p0, %p1960_p5  ;;  %p1761_p7 = por %p1760_p4, %p1759_p3 }
  0x51   : > { %1339 = vmatmul.msk.f32.gmra.mxu0 %vm689_vm0, %v680_v6 }
  0x52   : > { %p1757_p2 = pneg %p1756_p1 }
  0x54   : > { %p1762_p8 = pnand %p1761_p7, %p1757_p2 }
  0xc6   : > { %v713_v11 = vpop.f32.mrf.mxu0 }
  0xc7   : > { %v714_v12 = vadd.f32 %v1482_v10, %v713_v11  ;;  %v922_v11 = vld [vmem:[#allocation7 + $0x10] sm:$0xff] }
  0xc9   : > { %v719_v13 = vmax.f32 %v714_v12, 0.0  ;;  %v921_v12 = vld [vmem:[#allocation7 + $0x8] sm:$0xff] }
  0xcb   : > { %1340 = vmatmul.msk.f32.vlgmr.msra.gmra.mxu1 %vm689_vm0, %v719_v13  ;;  %v920_v13 = vld [vmem:[#allocation7] sm:$0xff] }
  0xce   : > { %v716_v14 = vpop.f32.mrf.mxu0 }
  0xcf   : > { %v717_v15 = vadd.f32 %v1482_v10, %v716_v14  ;;  %v923_v10 = vld [vmem:[#allocation7 + $0x18] sm:$0xff] }
  0xd1   : > { %v720_v16 = vmax.f32 %v717_v15, 0.0  ;;  %v991_v15 = vld [vmem:[#allocation10 + $0x18] sm:$0xff] }
  0xd2   : > { %1014 = vmatpush.msrb.mxu0 %v991_v15  ;;  %v1131_v15 = vld [vmem:[%s2191_s16] sm:$0x1] }
  0xd3   : > { %1341 = vmatmul.msk.f32.gmra.mxu1 %vm689_vm0, %v720_v16  ;;  %v990_v16 = vld [vmem:[#allocation10 + $0x10] sm:$0xff] }
  0xd4   : > { %1015 = vmatpush.msrb.mxu0 %v990_v16 }
 0x148   : > { %v752_v17 = vpop.f32.mrf.mxu1 }
 0x149   : > { %v753_v19 = vadd.f32 %v1483_v18, %v752_v17  ;;  %v989_v17 = vld [vmem:[#allocation10 + $0x8] sm:$0xff] }
 0x14a   : > { %1016 = vmatpush.msrb.mxu0 %v989_v17 }
 0x14b   : > { %v2086_v23 = vmax.f32 %v753_v19, 0.0 }
 0x150   : > { %v755_v20 = vpop.f32.mrf.mxu1 }
 0x151   : > { %v756_v21 = vadd.f32 %v1483_v18, %v755_v20  ;;  %v988_v20 = vld [vmem:[#allocation10] sm:$0xff] }
 0x152   : > { %1017 = vmatpush.msrb.mxu0 %v988_v20 }
 0x153   : > { %v2084_v22 = vmax.f32 %v756_v21, 0.0 }
 0x155   : > { %1342 = vmatpush.xpose.msk.msra.mxu2 %vm689_vm0, %v2084_v22  ;;  %860 = vmatpush.msra.mxu3 %v2084_v22 }
 0x157   : > { %915 = vmatpush.msrb.mxu3 %v2086_v23 }
 0x158   : > { %1343 = vmatmul.msk.f32.vlgmr.msra.gmra.mxu2 %vm689_vm0, %v2086_v23 }
 0x159   : > { %946 = vmatpush.msrb.mxu2 %v927_v1  ;;  %v1130_v1 = vld [vmem:[%s2190_s15 + $0x18] sm:$0xff] }
 0x15b   : > { %947 = vmatpush.msrb.mxu2 %v926_v2  ;;  %v1129_v2 = vld [vmem:[%s2190_s15 + $0x10] sm:$0xff] }
 0x15d   : > { %948 = vmatpush.msrb.mxu2 %v925_v4 }
 0x15f   : > { %949 = vmatpush.msrb.mxu2 %v924_v7 }
 0x1db   : > { %v783_v24 = vpop.f32.mrf.mxu2 }
 0x1dc   : > { %v787_v25 = vsel %vm786_vm1, %v783_v24, -inf }
 0x1dd   : > { %788 = vmax.xlane.f32.xlu0 %v787_v25  ;;  %v811_v26 = vrot.slane %v787_v25, 4 }
 0x1df   : > { %v812_v27 = vmax.f32 %v787_v25, %v811_v26 }
 0x1e1   : > { %v813_v28 = vrot.slane %v812_v27, 2 }
 0x1e3   : > { %v814_v29 = vmax.f32 %v812_v27, %v813_v28 }
 0x1e5   : > { %v815_v30 = vrot.slane %v814_v29, 1 }
 0x1e7   : > { %v816_v31 = vmax.f32 %v814_v29, %v815_v30 }
 0x1e9   : > { %v817_v32 = vsub.f32 %v783_v24, %v816_v31 }
 0x1eb   : > { %v818_v33 = vmul.f32 1.442695, %v817_v32  ;;  %v1044_v32 = vld [vmem:[#allocation11 + $0x18] sm:$0xff] }
 0x1ec   : > { %1087 = vmatpush.msra.mxu2 %v1044_v32 }
 0x1ed   : > { %1486 = vpow2.f32 %v818_v33  ;;  %v1043_v33 = vld [vmem:[#allocation11 + $0x10] sm:$0xff] }
 0x1ee   : > { %1088 = vmatpush.msra.mxu2 %v1043_v33 }
 0x1f3   : > { %v1487_v34 = vpop.eup %1486 }
 0x1f4   : > { %v820_v35 = vsel %vm786_vm1, %v1487_v34, 0.0 }
 0x1f5   : > { %v821_v36 = vrot.slane %v820_v35, 4 }
 0x1f7   : > { %v822_v37 = vadd.f32 %v821_v36, %v820_v35  ;;  %v1041_v35 = vld [vmem:[#allocation11] sm:$0xff]  ;;  %v1048_v36 = vld [vmem:[#allocation13 + $0x18] sm:$0xff] }
 0x1f8   : > { %1064 = vmatpush.msrb.mxu1 %v1048_v36 }
 0x1f9   : > { %v823_v38 = vrot.slane %v822_v37, 2 }
 0x1fb   : > { %v824_v39 = vadd.f32 %v823_v38, %v822_v37  ;;  %v1047_v37 = vld [vmem:[#allocation13 + $0x10] sm:$0xff]  ;;  %v1046_v38 = vld [vmem:[#allocation13 + $0x8] sm:$0xff] }
 0x1fc   : > { %1065 = vmatpush.msrb.mxu1 %v1047_v37 }
 0x1fd   : > { %v825_v40 = vrot.slane %v824_v39, 1 }
 0x1fe   : > { %1066 = vmatpush.msrb.mxu1 %v1046_v38 }
 0x1ff   : > { %v826_v41 = vadd.f32 %v825_v40, %v824_v39  ;;  %v1045_v39 = vld [vmem:[#allocation13] sm:$0xff] }
 0x200   : > { %1067 = vmatpush.msrb.mxu1 %v1045_v39  ;;  %v1485_v40 = vld [vmem:[%s2184_s9] ss:$0 sm:$0xff] }
 0x201   : > { %1488 = vrcp.f32 %v826_v41  ;;  %v838_v45 = vand.u32 2147483648, %v826_v41  ;;  %v836_v47 = vand.u32 2147483647, %v826_v41  ;;  %vm832_vm3 = vweird.f32 %v826_v41 }
 0x203   : > { %v839_v49 = vor.u32 1.1754944e-38, %v838_v45  ;;  %vm837_vm5 = vcmp.eq.f32.partialorder %v836_v47, 8.507059e+37 }
 0x207   : > { %v1489_v42 = vpop.eup %1488 }
 0x208   : > { %v828_v43 = vmul.f32 %v1489_v42, %v826_v41  ;;  %vm833_vm2 = vweird.f32 %v1489_v42 }
 0x209   : > { %vm834_vm4 = vmor %vm832_vm3, %vm833_vm2 }
 0x20a   : > { %v829_v44 = vsub.f32 1.0, %v828_v43 }
 0x20c   : > { %v830_v46 = vmul.f32 %v1489_v42, %v829_v44 }
 0x20e   : > { %v831_v48 = vadd.f32 %v1489_v42, %v830_v46 }
 0x210   : > { %v835_v50 = vsel %vm834_vm4, %v1489_v42, %v831_v48 }
 0x211   : > { %v840_v51 = vsel %vm837_vm5, %v839_v49, %v835_v50 }
 0x212   : > { %v841_v52 = vmul.f32 %v1487_v34, %v840_v51  ;;  %v1042_v34 = vld [vmem:[#allocation11 + $0x8] sm:$0xff] }
 0x213   : > { %1089 = vmatpush.msra.mxu2 %v1042_v34 }
 0x214   : > { %865 = vxpose.xlu1.b32.start.end [1/1] (short) (narrow) %v841_v52, 8 }
 0x215   : > { %1090 = vmatpush.msra.mxu2 %v1041_v35 }
 0x250   : > { %v789_v53 = vpop.xlane.xlu0 %788 }
 0x251   : > { %v790_v54 = vsub.f32 %v783_v24, %v789_v53 }
 0x253   : > { %v791_v55 = vmul.f32 1.442695, %v790_v54 }
 0x255   : > { %1490 = vpow2.f32 %v791_v55 }
 0x25b   : > { %v1491_v56 = vpop.eup %1490 }
 0x25c   : > { %v793_v57 = vsel %vm786_vm1, %v1491_v56, 0.0 }
 0x25d   : > { %794 = vadd.xlane.f32.xlu0 %v793_v57 }
 0x2b8   : > { %v881_v14 = vpop.trf.xlu1 }
 0x2d0   : > { %v795_v58 = vpop.xlane.xlu0 %794 }
 0x2d1   : > { %1492 = vrcp.f32 %v795_v58  ;;  %v807_v62 = vand.u32 2147483648, %v795_v58  ;;  %v805_v0 = vand.u32 2147483647, %v795_v58  ;;  %vm801_vm7 = vweird.f32 %v795_v58 }
 0x2d3   : > { %v808_v5 = vor.u32 1.1754944e-38, %v807_v62  ;;  %vm806_vm9 = vcmp.eq.f32.partialorder %v805_v0, 8.507059e+37  ;;  %v1100_v62 = vld [vmem:[#allocation14 + $0x10] sm:$0xff]  ;;  %v1098_v0 = vld [vmem:[#allocation14] sm:$0xff] }
 0x2d7   : > { %v1493_v59 = vpop.eup %1492 }
 0x2d8   : > { %v797_v60 = vmul.f32 %v1493_v59, %v795_v58  ;;  %vm802_vm6 = vweird.f32 %v1493_v59 }
 0x2d9   : > { %vm803_vm8 = vmor %vm801_vm7, %vm802_vm6 }
 0x2da   : > { %v798_v61 = vsub.f32 1.0, %v797_v60 }
 0x2dc   : > { %v799_v63 = vmul.f32 %v1493_v59, %v798_v61  ;;  %v1101_v61 = vld [vmem:[#allocation14 + $0x18] sm:$0xff] }
 0x2dd   : > { %1118 = vmatpush.msra.mxu1 %v1101_v61 }
 0x2de   : > { %v800_v3 = vadd.f32 %v1493_v59, %v799_v63  ;;  %v1099_v63 = vld [vmem:[#allocation14 + $0x8] sm:$0xff] }
 0x2df   : > { %1119 = vmatpush.msra.mxu1 %v1100_v62 }
 0x2e0   : > { %v804_v6 = vsel %vm803_vm8, %v1493_v59, %v800_v3  ;;  %v1128_v3 = vld [vmem:[%s2190_s15 + $0x8] sm:$0xff] }
 0x2e1   : > { %v809_v8 = vsel %vm806_vm9, %v808_v5, %v804_v6  ;;  %1120 = vmatpush.msra.mxu1 %v1099_v63  ;;  %v1095_v6 = vld [vmem:[%s2187_s12] sm:$0x1] }
 0x2e2   : > { %v810_v9 = vmul.f32 %v1491_v56, %v809_v8 }
 0x2e3   : > { %1121 = vmatpush.msra.mxu1 %v1098_v0 }
 0x2e4   : > { %1344 = vmatmul.msk.f32.vlgmr.msra.gmra.mxu3 %vm786_vm1, %v810_v9 }
 0x2e5   : > { %969 = vmatpush.msra.mxu3 %v923_v10  ;;  %v1127_v10 = vld [vmem:[%s2190_s15] sm:$0xff] }
 0x2e7   : > { %970 = vmatpush.msra.mxu3 %v922_v11  ;;  %v1102_v11 = vld [vmem:[%s2189_s14] sm:$0x1] }
 0x2e9   : > { %971 = vmatpush.msra.mxu3 %v921_v12 }
 0x2eb   : > { %972 = vmatpush.msra.mxu3 %v920_v13 }
 0x2ec   : > { %1345 = vmatmul.msk.f32.vlgmr.msrb.gmra.mxu3 %vm786_vm1, %v881_v14 }
 0x2ed   : > { %1147 = vmatpush.msrb.mxu3 %v1130_v1 }
 0x2ef   : > { %1148 = vmatpush.msrb.mxu3 %v1129_v2 }
 0x2f1   : > { %1149 = vmatpush.msrb.mxu3 %v1128_v3 }
 0x2f3   : > { %1150 = vmatpush.msrb.mxu3 %v1127_v10 }
 0x2f4   : > { %1348 = vmatmul.msk.f32.vlgmr.msra.gmra.mxu3 %vm689_vm0, %v2086_v23  ;;  %v1484_v23 = vld [vmem:[%s2182_s7] ss:$0 sm:$0xff] }
 0x2fc   : > { %1349 = vmatmul.msk.f32.gmra.mxu3 %vm689_vm0, %v2084_v22 }
 0x367   : > { %v862_v18 = vpop.f32.mrf.mxu3 }
 0x368   : > { %1346 = vmatmul.msk.f32.vlgmr.msrb.gmra.mxu2 %vm689_vm0, %v862_v18 }
 0x36f   : > { %v917_v19 = vpop.f32.mrf.mxu3 }
 0x370   : > { %1347 = vmatmul.msk.f32.gmra.mxu2 %vm689_vm0, %v917_v19 }
 0x377   : > { %v974_v21 = vpop.f32.mrf.mxu3 }
 0x37f   : > { %v977_v27 = vpop.f32.mrf.mxu3 }
 0x3eb   : > { %v951_v22 = vpop.f32.mrf.mxu2 }
 0x3ec   : > { %v975_v24 = vadd.f32 %v974_v21, %v951_v22 }
 0x3ee   : > { %v984_v25 = vadd.f32 %v1484_v23, %v975_v24 }
 0x3f0   : > { %v986_v26 = vmax.f32 %v984_v25, 0.0 }
 0x3f2   : > { %1350 = vmatmul.msk.f32.vlgmr.msrb.gmra.mxu0 %vm689_vm0, %v986_v26 }
 0x3f3   : > { %v954_v28 = vpop.f32.mrf.mxu2 }
 0x3f4   : > { %v978_v29 = vadd.f32 %v977_v27, %v954_v28 }
 0x3f6   : > { %v985_v30 = vadd.f32 %v1484_v23, %v978_v29 }
 0x3f8   : > { %v987_v31 = vmax.f32 %v985_v30, 0.0 }
 0x3fa   : > { %1351 = vmatmul.msk.f32.gmra.mxu0 %vm689_vm0, %v987_v31 }
 0x46f   : > { %v1019_v41 = vpop.f32.mrf.mxu0 }
 0x470   : > { %v1020_v42 = vadd.f32 %v1485_v40, %v1019_v41 }
 0x472   : > { %v1025_v43 = vmax.f32 %v1020_v42, 0.0 }
 0x474   : > { %v1027_v44 = vsel %vm689_vm0, %v1025_v43, 0.0 }
 0x475   : > { %v1028_v45 = vrot.slane %v1027_v44, 4 }
 0x477   : > { %v1029_v46 = vadd.f32 %v1028_v45, %v1027_v44  ;;  %v1022_v47 = vpop.f32.mrf.mxu0 }
 0x478   : > { %v1023_v48 = vadd.f32 %v1485_v40, %v1022_v47 }
 0x479   : > { %v1030_v49 = vrot.slane %v1029_v46, 2 }
 0x47a   : > { %v1026_v50 = vmax.f32 %v1023_v48, 0.0 }
 0x47b   : > { %v1031_v51 = vadd.f32 %v1030_v49, %v1029_v46 }
 0x47c   : > { %v1034_v52 = vsel %vm689_vm0, %v1026_v50, 0.0 }
 0x47d   : > { %v1032_v53 = vrot.slane %v1031_v51, 1  ;;  %v1035_v54 = vrot.slane %v1034_v52, 4 }
 0x47f   : > { %v1033_v55 = vadd.f32 %v1032_v53, %v1031_v51  ;;  %v1036_v56 = vadd.f32 %v1035_v54, %v1034_v52 }
 0x481   : > { %v1037_v57 = vrot.slane %v1036_v56, 2  ;;  %1353 = vmatmul.msk.f32.vlgmr.msra.gmra.mxu2 %vm689_vm0, %v1033_v55 }
 0x483   : > { %v1038_v58 = vadd.f32 %v1037_v57, %v1036_v56 }
 0x485   : > { %v1039_v59 = vrot.slane %v1038_v58, 1 }
 0x487   : > { %v1040_v60 = vadd.f32 %v1039_v59, %v1038_v58 }
 0x489   : > { %1352 = vmatmul.msk.f32.vlgmr.msrb.gmra.mxu1 %vm689_vm0, %v1040_v60 }
 0x504   : > { %v1092_v4 = vpop.f32.mrf.mxu2 }
 0x506   : > { %v1069_v5 = vpop.f32.mrf.mxu1 }
 0x507   : > { %v1093_v7 = vadd.f32 %v1092_v4, %v1069_v5 }
 0x509   : > { %v1096_v8 = vadd.f32 %v1095_v6, %v1093_v7 }
 0x50b   : > { %v1097_v9 = vmax.f32 %v1096_v8, 0.0 }
 0x50d   : > { %1354 = vmatmul.msk.f32.vlgmr.msra.gmra.mxu1 %vm689_vm0, %v1097_v9 }
 0x58a   : > { %v1123_v12 = vpop.f32.mrf.mxu1 }
 0x58b   : > { %v1124_v13 = vadd.f32 %v1123_v12, %v1102_v11 }
 0x58d   : > { %v1126_v14 = vmax.f32 %v1124_v13, 0.0 }
 0x58f   : > { %1355 = vmatmul.msk.f32.vlgmr.msrb.gmra.mxu3 %vm689_vm0, %v1126_v14 }
 0x612   : > { %v1152_v16 = vpop.f32.mrf.mxu3 }
 0x613   : > { %v1153_v17 = vadd.f32 %v1152_v16, %v1131_v15 }
 0x615   : > { %v1156_v18 = vsel %vm1155_vm10, %v1153_v17, -inf }
 0x616   : > { %1157 = vmax.xlane.f32.xlu1 %v1156_v18 }
 0x689   : > { %v1158_v19 = vpop.xlane.xlu1 %1157 }
 0x68a   : > { %v1159_v20 = vsub.f32 %v1153_v17, %v1158_v19 }
 0x68c   : > { %v1160_v21 = vmul.f32 1.442695, %v1159_v20 }
 0x68e   : > { %1494 = vpow2.f32 %v1160_v21 }
 0x694   : > { %v1495_v23 = vpop.eup %1494 }
 0x695   : > { %v1162_v22 = vsel %vm1155_vm10, %v1495_v23, 0.0 }
 0x696   : > { %1163 = vadd.xlane.f32.xlu2 %v1162_v22 }
 0x709   : > { %v1164_v24 = vpop.xlane.xlu2 %1163 }
 0x70a   : > { %1496 = vlog2.f32 %v1164_v24 }
 0x710   : > { %v1497_v25 = vpop.eup %1496 }
 0x711   : > { %v1166_v26 = vmul.f32 0.6931472, %v1497_v25 }
 0x713   : > { %v1167_v27 = vsub.f32 %v1159_v20, %v1166_v26 }
 0x715   : > { %1168 = vst.msk [vmem:[%s673_s21] sm:$0x1] %vm1155_vm10, %v1167_v27 }
 0x716   : > { %1765 = shalt.err (!%p1762_p8)
}
 0x717   : > { %1391 = dma.vmem_to_hbm [thread:$0]  (%p1960_p5), %s1181_s22, 16, %s1183_s23, %s1170_s1  }
 0x718 PF: > { %s2227_s30 = sld [smem:[#allocation26_spill]] }
 0x719   : > { %s2228_s25 = sld [smem:[#allocation23_spill]] }
 0x71e   : > { %p1438_p9 = scmp.ge.s32.totalorder %s2227_s30, 2 }
 0x71f   : > { %s1194_s19 = sand.u32 1, %s2228_s25  }
 0x720   : > { %p1419_p10 = pnand %p1438_p9, %p1964_p6  ;;  %s1195_s26 = scalar_lea.sflag [#allocation4], %s1194_s19 }
 0x722   : > { %p1420_p11 = pneg %p1419_p10 }
 0x724   : > { %1803 = dma.done.wait (%p1420_p11), %s1195_s26, 16  }
 0x725   : > { %1805 = vsyncadd (%p1420_p11), %s1195_s26, 4294967280  ;;  %s2230_s27 = sld [smem:[#allocation27_spill]] }
 0x726   : > { %s2231_s24 = sld [smem:[#allocation24_spill]] }
 0x727   : > { %s2232_s25 = sld [smem:[#allocation25_spill]] }
 0x728   : > { %s2233_s26 = sld [smem:[#allocation28_spill]] }
 0x72b   : > { %p32_p12 = scmp.ge.s32.totalorder %s2230_s27, 4  }
 0x72d   :  { %34 = sbr.rel (!%p32_p12) target bundleno = 14 (0xe), region = 156 }
 0x732   :  { %1200 = vsyncpa [#allocation3], 1 }
 0x733   :  { %1202 = vsyncpa [#allocation3 + $0x1], 1 }
 0x734   :  { %1203 = vsyncpa [#allocation6], 1 }
 0x735   :  { %1204 = vsyncpa [#allocation9], 1 }
 0x736   :  { %1205 = vsyncpa [#allocation12], 1 }
 0x737   :  { %1206 = vsyncpa [#allocation15], 1 }
 0x738   :  { %1207 = vsyncpa [#allocation4], 1 }
 0x739   :  { %1209 = vsyncpa [#allocation4 + $0x1], 1 }

// kernel: tpu_custom_call.1
= control target key start
LH: loop header
LB: loop body
LE: loop exit
PB: predicated region body
PF: predicated region fallthrough
CT: control target
= control target key end

     0   :  { %s2175_s0 = inlined_call_operand.vmem [shape: f32[2,16,32], index: 0, kind: input, shape index: {}]   ;;  %s2176_s1 = inlined_call_operand.hbm [shape: f32[32,32], index: 1, kind: input, shape index: {}]   ;;  %s2177_s2 = inlined_call_operand.vmem [shape: f32[1,32], index: 2, kind: input, shape index: {}]   ;;  %s2178_s3 = inlined_call_operand.hbm [shape: f32[32,32], index: 3, kind: input, shape index: {}]   ;;  %s2179_s4 = inlined_call_operand.vmem [shape: f32[1,32], index: 4, kind: input, shape index: {}]   ;;  %s2180_s5 = inlined_call_operand.hbm [shape: f32[32,32], index: 5, kind: input, shape index: {}]   ;;  %s2181_s6 = inlined_call_operand.hbm [shape: f32[32,32], index: 6, kind: input, shape index: {}]   ;;  %s2182_s7 = inlined_call_operand.vmem [shape: f32[1,32], index: 7, kind: input, shape index: {}]   ;;  %s2183_s8 = inlined_call_operand.hbm [shape: f32[32,32], index: 8, kind: input, shape index: {}]   ;;  %s2184_s9 = inlined_call_operand.vmem [shape: f32[1,32], index: 9, kind: input, shape index: {}]   ;;  %s2185_s10 = inlined_call_operand.hbm [shape: f32[32,32], index: 10, kind: input, shape index: {}]   ;;  %s2186_s11 = inlined_call_operand.hbm [shape: f32[32,32], index: 11, kind: input, shape index: {}]   ;;  %s2187_s12 = inlined_call_operand.vmem [shape: f32[1,32], index: 12, kind: input, shape index: {}]   ;;  %s2188_s13 = inlined_call_operand.hbm [shape: f32[32,32], index: 13, kind: input, shape index: {}]   ;;  %s2189_s14 = inlined_call_operand.vmem [shape: f32[1,32], index: 14, kind: input, shape index: {}]   ;;  %s2190_s15 = inlined_call_operand.vmem [shape: f32[32,8], index: 15, kind: input, shape index: {}]   ;;  %s2191_s16 = inlined_call_operand.vmem [shape: f32[1,8], index: 16, kind: input, shape index: {}]   ;;  %s2192_s17 = inlined_call_operand.hbm [shape: f32[2,1,8], index: 17, kind: output, shape index: {}]  }
   0x1   :  { %2203 = sst [smem:[#allocation31_spill]] %s2175_s0 }
   0x2   :  { %2204 = sst [smem:[#allocation32_spill]] %s2176_s1 }
   0x3   :  { %2205 = sst [smem:[#allocation33_spill]] %s2178_s3 }
   0x4   :  { %2206 = sst [smem:[#allocation34_spill]] %s2181_s6 }
   0x5   :  { %2207 = sst [smem:[#allocation35_spill]] %s2192_s17 }
   0x6   :  { %22 = vsyncpa [#allocation3], 0 }
   0x7   :  { %23 = vsyncpa [#allocation6], 0 }
   0x8   :  { %24 = vsyncpa [#allocation9], 0 }
   0x9   :  { %25 = vsyncpa [#allocation12], 0 }
   0xa   :  { %26 = vsyncpa [#allocation15], 0 }
   0xb   :  { %27 = vsyncpa [#allocation4], 0 }
   0xc   :  { %29 = vsyncpa [#allocation4 + $0x1], 0  ;;  %s1922_s24 = smov 0   ;;  %s1924_s25 = smov 0  }
   0xd   :  { %s1926_s26 = smov 0   ;;  %s1928_s27 = smov 0  }
   0xe LB: > { %2208 = sst [smem:[#allocation23_spill]] %s1808_s24  ;;  %s1943_s28 = sadd.s32 4294967295, %s1820_s27   ;;  %s1820_s27 = sphi %s1928_s27, %s2230_s27   ;;  %s1816_s26 = sphi %s1926_s26, %s2233_s26   ;;  %s1812_s25 = sphi %s1924_s25, %s2232_s25   ;;  %s1808_s24 = sphi %s1922_s24, %s2231_s24  }
   0xf   : > { %2209 = sst [smem:[#allocation24_spill]] %s1812_s25  ;;  %s1316_s29 = sadd.s32 4294967294, %s1820_s27  }
  0x10   : > { %2210 = sst [smem:[#allocation25_spill]] %s1816_s26  ;;  %s1947_s0 = sadd.s32 1, %s1820_s27  }
  0x11   : > { %2211 = sst [smem:[#allocation26_spill]] %s1820_s27  ;;  %s404_s30 = sadd.s32 1, %s1816_s26 }
  0x12   : > { %2212 = sst [smem:[#allocation27_spill]] %s1947_s0  ;;  %s401_s18 = ssub.s32 %s1820_s27, %s1947_s0 }
  0x13   : > { %p414_p0 = scmp.ne.s32.totalorder %s1816_s26, %s1812_s25  ;;  %p402_p1 = scmp.eq.s32.totalorder %s401_s18, 0 }
  0x14   : > { %p415_p2 = scmp.eq.s32.totalorder %s1943_s28, 1  ;;  %p420_p3 = scmp.ne.s32.totalorder %s1812_s25, %s1808_s24 }
  0x15   : > { %p421_p4 = scmp.eq.s32.totalorder %s1316_s29, 1  ;;  %p1317_p7 = scmp.ge.s32.totalorder %s1820_s27, 1 }
  0x16   : > { %s1958_s19 = scalar_select %p402_p1, %s1816_s26, %s404_s30  }
  0x17   : > { %p1960_p5 = por %p415_p2, %p414_p0  ;;  %p1964_p6 = por %p421_p4, %p420_p3 }
  0x18   : > { %2213 = sst [smem:[#allocation28_spill]] %s1958_s19  ;;  %p428_p8 = scmp.lt.s32.totalorder %s1820_s27, 3 }
  0x19   : > { %s2214_s1 = scalar_select %p1960_p5, 1, 0 }
  0x1a   : > { %s2216_s20 = scalar_select %p1964_p6, 1, 0 }
  0x1b   : > { %2215 = sst [smem:[#allocation29_spill]] %s2214_s1  ;;  %p1422_p9 = scmp.eq.s32.totalorder %s1943_s28, 0 }
  0x1c   : > { %2217 = sst [smem:[#allocation30_spill]] %s2216_s20  ;;  %p1971_p10 = pnand %p1317_p7, %p428_p8 }
  0x1d   : > { %s2219_s3 = sld [smem:[#allocation33_spill]]  ;;  %s1822_s0 = smov [#allocation5]  }
  0x1e   : > { %p1393_p11 = pneg %p1971_p10  ;;  %s2220_s6 = sld [smem:[#allocation34_spill]] }
  0x1f   : > { %s458_s20 = sshll.u32 %s1822_s0, 4  ;;  %s1823_s22 = smov 128   ;;  %s459_s20 = int_to_ptr.vmem [resolvable:$true] %s458_s20 }
  0x20   : > { %p1985_p12 = pnand %p1422_p9, %p1393_p11  ;;  %s1824_s23 = smov 8  }
  0x21   : > { %s1825_s30 = smov [#allocation8]   ;;  %s521_s24 = sshll.u32 %s2185_s10, 4  ;;  %s522_s24 = int_to_ptr.hbm [resolvable:$true] %s521_s24 }
  0x22   : > { %s489_s18 = sshll.u32 %s1825_s30, 4  ;;  %s2222_s1 = sld [smem:[#allocation32_spill]]  ;;  %s490_s18 = int_to_ptr.vmem [resolvable:$true] %s489_s18 }
  0x23   : > { %s456_s29 = sshll.u32 %s2219_s3, 4  ;;  %s1826_s25 = smov [#allocation11]   ;;  %s457_s29 = int_to_ptr.hbm [resolvable:$true] %s456_s29 }
  0x24   : > { %s487_s19 = sshll.u32 %s2220_s6, 4  ;;  %s1827_s3 = smov [#allocation2]   ;;  %s488_s19 = int_to_ptr.hbm [resolvable:$true] %s487_s19 }
  0x25   : > { %1399 = dma.hbm_to_vmem [thread:$0]  (!%p1985_p12), %s457_s29, 512, %s459_s20, [#allocation6], %s1823_s22, %s1823_s22, %s1824_s23  }
  0x26   : > { %1405 = dma.hbm_to_vmem [thread:$0]  (!%p1985_p12), %s488_s19, 512, %s490_s18, [#allocation9], %s1823_s22, %s1823_s22, %s1824_s23  }
  0x27   : > { %s523_s20 = sshll.u32 %s1826_s25, 4  ;;  %s441_s6 = sshll.u32 %s1827_s3, 4  ;;  %s524_s20 = int_to_ptr.vmem [resolvable:$true] %s523_s20  ;;  %s442_s6 = int_to_ptr.vmem [resolvable:$true] %s441_s6 }
  0x28   : > { %s439_s17 = sshll.u32 %s2222_s1, 4  ;;  %s473_s19 = sshll.u32 %s2180_s5, 4  ;;  %s440_s17 = int_to_ptr.hbm [resolvable:$true] %s439_s17  ;;  %s474_s19 = int_to_ptr.hbm [resolvable:$true] %s473_s19 }
  0x29   : > { %1411 = dma.hbm_to_vmem [thread:$0]  (!%p1985_p12), %s522_s24, 512, %s524_s20, [#allocation12], %s1823_s22, %s1823_s22, %s1824_s23  }
  0x2a   : > { %1396 = dma.hbm_to_vmem [thread:$0]  (!%p1985_p12), %s440_s17, 512, %s442_s6, [#allocation3], %s1823_s22, %s1823_s22, %s1824_s23  }
  0x2b   : > { %s504_s1 = sshll.u32 %s2183_s8, 4  ;;  %s1828_s18 = smov [#allocation7]   ;;  %s505_s1 = int_to_ptr.hbm [resolvable:$true] %s504_s1 }
  0x2c   : > { %s475_s24 = sshll.u32 %s1828_s18, 4  ;;  %s1829_s0 = smov [#allocation10]   ;;  %s476_s24 = int_to_ptr.vmem [resolvable:$true] %s475_s24 }
  0x2d   : > { %1402 = dma.hbm_to_vmem [thread:$0]  (!%p1985_p12), %s474_s19, 512, %s476_s24, [#allocation6], %s1823_s22, %s1823_s22, %s1824_s23  }
  0x2e   : > { %s506_s20 = sshll.u32 %s1829_s0, 4  ;;  %s535_s17 = sshll.u32 %s2186_s11, 4  ;;  %s507_s20 = int_to_ptr.vmem [resolvable:$true] %s506_s20  ;;  %s536_s17 = int_to_ptr.hbm [resolvable:$true] %s535_s17 }
  0x2f   : > { %1408 = dma.hbm_to_vmem [thread:$0]  (!%p1985_p12), %s505_s1, 512, %s507_s20, [#allocation9], %s1823_s22, %s1823_s22, %s1824_s23  }
  0x30   : > { %s552_s25 = sshll.u32 %s2188_s13, 4  ;;  %s1830_s27 = smov [#allocation13]   ;;  %s553_s25 = int_to_ptr.hbm [resolvable:$true] %s552_s25 }
  0x31   : > { %s537_s19 = sshll.u32 %s1830_s27, 4  ;;  %s1831_s18 = smov [#allocation14]   ;;  %s538_s19 = int_to_ptr.vmem [resolvable:$true] %s537_s19 }
  0x32   : > { %1414 = dma.hbm_to_vmem [thread:$0]  (!%p1985_p12), %s536_s17, 512, %s538_s19, [#allocation12], %s1823_s22, %s1823_s22, %s1824_s23  }
  0x33   : > { %s554_s24 = sshll.u32 %s1831_s18, 4  ;;  %587 = sbr.rel (%p1971_p10) target bundleno = 1816 (0x718), region = 88  ;;  %s555_s24 = int_to_ptr.vmem [resolvable:$true] %s554_s24 }
  0x34   : > { %1417 = dma.hbm_to_vmem [thread:$0]  (!%p1985_p12), %s553_s25, 512, %s555_s24, [#allocation15], %s1823_s22, %s1823_s22, %s1824_s23  }
  0x38   : > { %1783 = dma.done.wait (%p1422_p9), [#allocation3], 512  }
  0x39   : > { %1785 = vsyncadd (%p1422_p9), [#allocation3], 4294966784 }
  0x3a   : > { %1787 = dma.done.wait (%p1422_p9), [#allocation6], 1024  }
  0x3b   : > { %1789 = vsyncadd (%p1422_p9), [#allocation6], 4294966272 }
  0x3c   : > { %1791 = dma.done.wait (%p1422_p9), [#allocation9], 1024  }
  0x3d   : > { %1793 = vsyncadd (%p1422_p9), [#allocation9], 4294966272 }
  0x3e   : > { %1795 = dma.done.wait (%p1422_p9), [#allocation12], 1024  }
  0x3f   : > { %1797 = vsyncadd (%p1422_p9), [#allocation12], 4294966272 }
  0x40   : > { %1799 = dma.done.wait (%p1422_p9), [#allocation15], 512  }
  0x41   : > { %1801 = vsyncadd (%p1422_p9), [#allocation15], 4294966784  ;;  %p674_p13 = scmp.lt.s32.totalorder %s1943_s28, 1  ;;  %v684_v0 = vld [vmem:[#allocation2 + $0x18] sm:$0xff]  ;;  %v683_v1 = vld [vmem:[#allocation2 + $0x10] sm:$0xff]  ;;  %s2223_s1 = sld [smem:[#allocation31_spill]] }
  0x42   : > { %708 = vmatpush.msra.mxu0 %v684_v0  ;;  %v682_v2 = vld [vmem:[#allocation2 + $0x8] sm:$0xff]  ;;  %v724_v3 = vld [vmem:[#allocation5 + $0x18] sm:$0xff]  ;;  %v681_v4 = vld [vmem:[#allocation2] sm:$0xff]  ;;  %vm689_vm0 = vcmask 261120   ;;  %vm786_vm1 = vcmask 64512   ;;  %s2224_s30 = sld [smem:[#allocation24_spill]] }
  0x43   : > { %s675_s26 = scalar_select %p674_p13, %s1943_s28, 1  ;;  %747 = vmatpush.msra.mxu1 %v724_v3  ;;  %v723_v7 = vld [vmem:[#allocation5 + $0x10] sm:$0xff]  ;;  %v722_v8 = vld [vmem:[#allocation5 + $0x8] sm:$0xff]  ;;  %v721_v9 = vld [vmem:[#allocation5] sm:$0xff]  ;;  %vm1155_vm10 = vcmask 57344  }
  0x44   : > { %709 = vmatpush.msra.mxu0 %v683_v1  ;;  %v1482_v10 = vld [vmem:[%s2177_s2] ss:$0 sm:$0xff]  ;;  %v927_v1 = vld [vmem:[#allocation8 + $0x18] sm:$0xff]  ;;  %s2225_s18 = sld [smem:[#allocation35_spill]] }
  0x45   : > { %s1358_s21 = sshll.u32 %s675_s26, 4  ;;  %748 = vmatpush.msra.mxu1 %v723_v7  ;;  %v1483_v18 = vld [vmem:[%s2179_s4] ss:$0 sm:$0xff] }
  0x46   : > { %710 = vmatpush.msra.mxu0 %v682_v2  ;;  %v926_v2 = vld [vmem:[#allocation8 + $0x10] sm:$0xff]  ;;  %v924_v7 = vld [vmem:[#allocation8] sm:$0xff] }
  0x47   : > { %s678_s0 = scalar_lea.vmem %s2223_s1, %s1358_s21  ;;  %749 = vmatpush.msra.mxu1 %v722_v8 }
  0x48   : > { %v679_v5 = vld [vmem:[%s678_s0] sm:$0xff]  ;;  %711 = vmatpush.msra.mxu0 %v681_v4  ;;  %v680_v6 = vld [vmem:[%s678_s0 + $0x8] sm:$0xff]  ;;  %s672_s25 = sand.u32 1, %s2224_s30  }
  0x49   : > { %1338 = vmatmul.msk.f32.vlgmr.msra.gmra.mxu0 %vm689_vm0, %v679_v5  ;;  %750 = vmatpush.msra.mxu1 %v721_v9  ;;  %v925_v4 = vld [vmem:[#allocation8 + $0x8] sm:$0xff]  ;;  %s673_s21 = scalar_lea.vmem [#allocation16], %s672_s25  ;;  %s1170_s1 = scalar_lea.sflag [#allocation4], %s672_s25 }
  0x4a   : > { %s1178_s26 = scalar_lea.hbm %s2225_s18, %s1943_s28  ;;  %s1180_s22 = sshll.u32 %s673_s21, 4  ;;  %s1181_s22 = int_to_ptr.vmem [resolvable:$true] %s1180_s22 }
  0x4b   : > { %s1182_s23 = sshll.u32 %s1178_s26, 4  ;;  %s1758_s29 = scalar_lea.hbm %s2225_s18, 2  ;;  %s1183_s23 = int_to_ptr.hbm [resolvable:$true] %s1182_s23 }
  0x4c   : > { %s1752_s0 = sshra.s32 %s1183_s23, 4  ;;  %s1753_s0 = int_to_ptr.hbm [resolvable:$true] %s1752_s0 }
  0x4d   : > { %s1754_s20 = scalar_lea.hbm %s1753_s0, 1  ;;  %p1759_p3 = scmp.lt.s32.totalorder %s1753_s0, %s2225_s18 }
  0x4e   : > { %p1755_p0 = scmp.ne.s32.totalorder %s1753_s0, %s1754_s20  ;;  %p1760_p4 = scmp.lt.s32.totalorder %s1758_s29, %s1754_s20 }
  0x50   : > { %p1756_p1 = pnand %p1755_p0, %p1960_p5  ;;  %p1761_p7 = por %p1760_p4, %p1759_p3 }
  0x51   : > { %1339 = vmatmul.msk.f32.gmra.mxu0 %vm689_vm0, %v680_v6 }
  0x52   : > { %p1757_p2 = pneg %p1756_p1 }
  0x54   : > { %p1762_p8 = pnand %p1761_p7, %p1757_p2 }
  0xc6   : > { %v713_v11 = vpop.f32.mrf.mxu0 }
  0xc7   : > { %v714_v12 = vadd.f32 %v1482_v10, %v713_v11  ;;  %v922_v11 = vld [vmem:[#allocation7 + $0x10] sm:$0xff] }
  0xc9   : > { %v719_v13 = vmax.f32 %v714_v12, 0.0  ;;  %v921_v12 = vld [vmem:[#allocation7 + $0x8] sm:$0xff] }
  0xcb   : > { %1340 = vmatmul.msk.f32.vlgmr.msra.gmra.mxu1 %vm689_vm0, %v719_v13  ;;  %v920_v13 = vld [vmem:[#allocation7] sm:$0xff] }
  0xce   : > { %v716_v14 = vpop.f32.mrf.mxu0 }
  0xcf   : > { %v717_v15 = vadd.f32 %v1482_v10, %v716_v14  ;;  %v923_v10 = vld [vmem:[#allocation7 + $0x18] sm:$0xff] }
  0xd1   : > { %v720_v16 = vmax.f32 %v717_v15, 0.0  ;;  %v991_v15 = vld [vmem:[#allocation10 + $0x18] sm:$0xff] }
  0xd2   : > { %1014 = vmatpush.msrb.mxu0 %v991_v15  ;;  %v1131_v15 = vld [vmem:[%s2191_s16] sm:$0x1] }
  0xd3   : > { %1341 = vmatmul.msk.f32.gmra.mxu1 %vm689_vm0, %v720_v16  ;;  %v990_v16 = vld [vmem:[#allocation10 + $0x10] sm:$0xff] }
  0xd4   : > { %1015 = vmatpush.msrb.mxu0 %v990_v16 }
 0x148   : > { %v752_v17 = vpop.f32.mrf.mxu1 }
 0x149   : > { %v753_v19 = vadd.f32 %v1483_v18, %v752_v17  ;;  %v989_v17 = vld [vmem:[#allocation10 + $0x8] sm:$0xff] }
 0x14a   : > { %1016 = vmatpush.msrb.mxu0 %v989_v17 }
 0x14b   : > { %v2086_v23 = vmax.f32 %v753_v19, 0.0 }
 0x150   : > { %v755_v20 = vpop.f32.mrf.mxu1 }
 0x151   : > { %v756_v21 = vadd.f32 %v1483_v18, %v755_v20  ;;  %v988_v20 = vld [vmem:[#allocation10] sm:$0xff] }
 0x152   : > { %1017 = vmatpush.msrb.mxu0 %v988_v20 }
 0x153   : > { %v2084_v22 = vmax.f32 %v756_v21, 0.0 }
 0x155   : > { %1342 = vmatpush.xpose.msk.msra.mxu2 %vm689_vm0, %v2084_v22  ;;  %860 = vmatpush.msra.mxu3 %v2084_v22 }
 0x157   : > { %915 = vmatpush.msrb.mxu3 %v2086_v23 }
 0x158   : > { %1343 = vmatmul.msk.f32.vlgmr.msra.gmra.mxu2 %vm689_vm0, %v2086_v23 }
 0x159   : > { %946 = vmatpush.msrb.mxu2 %v927_v1  ;;  %v1130_v1 = vld [vmem:[%s2190_s15 + $0x18] sm:$0xff] }
 0x15b   : > { %947 = vmatpush.msrb.mxu2 %v926_v2  ;;  %v1129_v2 = vld [vmem:[%s2190_s15 + $0x10] sm:$0xff] }
 0x15d   : > { %948 = vmatpush.msrb.mxu2 %v925_v4 }
 0x15f   : > { %949 = vmatpush.msrb.mxu2 %v924_v7 }
 0x1db   : > { %v783_v24 = vpop.f32.mrf.mxu2 }
 0x1dc   : > { %v787_v25 = vsel %vm786_vm1, %v783_v24, -inf }
 0x1dd   : > { %788 = vmax.xlane.f32.xlu0 %v787_v25  ;;  %v811_v26 = vrot.slane %v787_v25, 4 }
 0x1df   : > { %v812_v27 = vmax.f32 %v787_v25, %v811_v26 }
 0x1e1   : > { %v813_v28 = vrot.slane %v812_v27, 2 }
 0x1e3   : > { %v814_v29 = vmax.f32 %v812_v27, %v813_v28 }
 0x1e5   : > { %v815_v30 = vrot.slane %v814_v29, 1 }
 0x1e7   : > { %v816_v31 = vmax.f32 %v814_v29, %v815_v30 }
 0x1e9   : > { %v817_v32 = vsub.f32 %v783_v24, %v816_v31 }
 0x1eb   : > { %v818_v33 = vmul.f32 1.442695, %v817_v32  ;;  %v1044_v32 = vld [vmem:[#allocation11 + $0x18] sm:$0xff] }
 0x1ec   : > { %1087 = vmatpush.msra.mxu2 %v1044_v32 }
 0x1ed   : > { %1486 = vpow2.f32 %v818_v33  ;;  %v1043_v33 = vld [vmem:[#allocation11 + $0x10] sm:$0xff] }
 0x1ee   : > { %1088 = vmatpush.msra.mxu2 %v1043_v33 }
 0x1f3   : > { %v1487_v34 = vpop.eup %1486 }
 0x1f4   : > { %v820_v35 = vsel %vm786_vm1, %v1487_v34, 0.0 }
 0x1f5   : > { %v821_v36 = vrot.slane %v820_v35, 4 }
 0x1f7   : > { %v822_v37 = vadd.f32 %v821_v36, %v820_v35  ;;  %v1041_v35 = vld [vmem:[#allocation11] sm:$0xff]  ;;  %v1048_v36 = vld [vmem:[#allocation13 + $0x18] sm:$0xff] }
 0x1f8   : > { %1064 = vmatpush.msrb.mxu1 %v1048_v36 }
 0x1f9   : > { %v823_v38 = vrot.slane %v822_v37, 2 }
 0x1fb   : > { %v824_v39 = vadd.f32 %v823_v38, %v822_v37  ;;  %v1047_v37 = vld [vmem:[#allocation13 + $0x10] sm:$0xff]  ;;  %v1046_v38 = vld [vmem:[#allocation13 + $0x8] sm:$0xff] }
 0x1fc   : > { %1065 = vmatpush.msrb.mxu1 %v1047_v37 }
 0x1fd   : > { %v825_v40 = vrot.slane %v824_v39, 1 }
 0x1fe   : > { %1066 = vmatpush.msrb.mxu1 %v1046_v38 }
 0x1ff   : > { %v826_v41 = vadd.f32 %v825_v40, %v824_v39  ;;  %v1045_v39 = vld [vmem:[#allocation13] sm:$0xff] }
 0x200   : > { %1067 = vmatpush.msrb.mxu1 %v1045_v39  ;;  %v1485_v40 = vld [vmem:[%s2184_s9] ss:$0 sm:$0xff] }
 0x201   : > { %1488 = vrcp.f32 %v826_v41  ;;  %v838_v45 = vand.u32 2147483648, %v826_v41  ;;  %v836_v47 = vand.u32 2147483647, %v826_v41  ;;  %vm832_vm3 = vweird.f32 %v826_v41 }
 0x203   : > { %v839_v49 = vor.u32 1.1754944e-38, %v838_v45  ;;  %vm837_vm5 = vcmp.eq.f32.partialorder %v836_v47, 8.507059e+37 }
 0x207   : > { %v1489_v42 = vpop.eup %1488 }
 0x208   : > { %v828_v43 = vmul.f32 %v1489_v42, %v826_v41  ;;  %vm833_vm2 = vweird.f32 %v1489_v42 }
 0x209   : > { %vm834_vm4 = vmor %vm832_vm3, %vm833_vm2 }
 0x20a   : > { %v829_v44 = vsub.f32 1.0, %v828_v43 }
 0x20c   : > { %v830_v46 = vmul.f32 %v1489_v42, %v829_v44 }
 0x20e   : > { %v831_v48 = vadd.f32 %v1489_v42, %v830_v46 }
 0x210   : > { %v835_v50 = vsel %vm834_vm4, %v1489_v42, %v831_v48 }
 0x211   : > { %v840_v51 = vsel %vm837_vm5, %v839_v49, %v835_v50 }
 0x212   : > { %v841_v52 = vmul.f32 %v1487_v34, %v840_v51  ;;  %v1042_v34 = vld [vmem:[#allocation11 + $0x8] sm:$0xff] }
 0x213   : > { %1089 = vmatpush.msra.mxu2 %v1042_v34 }
 0x214   : > { %865 = vxpose.xlu1.b32.start.end [1/1] (short) (narrow) %v841_v52, 8 }
 0x215   : > { %1090 = vmatpush.msra.mxu2 %v1041_v35 }
 0x250   : > { %v789_v53 = vpop.xlane.xlu0 %788 }
 0x251   : > { %v790_v54 = vsub.f32 %v783_v24, %v789_v53 }
 0x253   : > { %v791_v55 = vmul.f32 1.442695, %v790_v54 }
 0x255   : > { %1490 = vpow2.f32 %v791_v55 }
 0x25b   : > { %v1491_v56 = vpop.eup %1490 }
 0x25c   : > { %v793_v57 = vsel %vm786_vm1, %v1491_v56, 0.0 }
 0x25d   : > { %794 = vadd.xlane.f32.xlu0 %v793_v57 }
 0x2b8   : > { %v881_v14 = vpop.trf.xlu1 }
 0x2d0   : > { %v795_v58 = vpop.xlane.xlu0 %794 }
 0x2d1   : > { %1492 = vrcp.f32 %v795_v58  ;;  %v807_v62 = vand.u32 2147483648, %v795_v58  ;;  %v805_v0 = vand.u32 2147483647, %v795_v58  ;;  %vm801_vm7 = vweird.f32 %v795_v58 }
 0x2d3   : > { %v808_v5 = vor.u32 1.1754944e-38, %v807_v62  ;;  %vm806_vm9 = vcmp.eq.f32.partialorder %v805_v0, 8.507059e+37  ;;  %v1100_v62 = vld [vmem:[#allocation14 + $0x10] sm:$0xff]  ;;  %v1098_v0 = vld [vmem:[#allocation14] sm:$0xff] }
 0x2d7   : > { %v1493_v59 = vpop.eup %1492 }
 0x2d8   : > { %v797_v60 = vmul.f32 %v1493_v59, %v795_v58  ;;  %vm802_vm6 = vweird.f32 %v1493_v59 }
 0x2d9   : > { %vm803_vm8 = vmor %vm801_vm7, %vm802_vm6 }
 0x2da   : > { %v798_v61 = vsub.f32 1.0, %v797_v60 }
 0x2dc   : > { %v799_v63 = vmul.f32 %v1493_v59, %v798_v61  ;;  %v1101_v61 = vld [vmem:[#allocation14 + $0x18] sm:$0xff] }
 0x2dd   : > { %1118 = vmatpush.msra.mxu1 %v1101_v61 }
 0x2de   : > { %v800_v3 = vadd.f32 %v1493_v59, %v799_v63  ;;  %v1099_v63 = vld [vmem:[#allocation14 + $0x8] sm:$0xff] }
 0x2df   : > { %1119 = vmatpush.msra.mxu1 %v1100_v62 }
 0x2e0   : > { %v804_v6 = vsel %vm803_vm8, %v1493_v59, %v800_v3  ;;  %v1128_v3 = vld [vmem:[%s2190_s15 + $0x8] sm:$0xff] }
 0x2e1   : > { %v809_v8 = vsel %vm806_vm9, %v808_v5, %v804_v6  ;;  %1120 = vmatpush.msra.mxu1 %v1099_v63  ;;  %v1095_v6 = vld [vmem:[%s2187_s12] sm:$0x1] }
 0x2e2   : > { %v810_v9 = vmul.f32 %v1491_v56, %v809_v8 }
 0x2e3   : > { %1121 = vmatpush.msra.mxu1 %v1098_v0 }
 0x2e4   : > { %1344 = vmatmul.msk.f32.vlgmr.msra.gmra.mxu3 %vm786_vm1, %v810_v9 }
 0x2e5   : > { %969 = vmatpush.msra.mxu3 %v923_v10  ;;  %v1127_v10 = vld [vmem:[%s2190_s15] sm:$0xff] }
 0x2e7   : > { %970 = vmatpush.msra.mxu3 %v922_v11  ;;  %v1102_v11 = vld [vmem:[%s2189_s14] sm:$0x1] }
 0x2e9   : > { %971 = vmatpush.msra.mxu3 %v921_v12 }
 0x2eb   : > { %972 = vmatpush.msra.mxu3 %v920_v13 }
 0x2ec   : > { %1345 = vmatmul.msk.f32.vlgmr.msrb.gmra.mxu3 %vm786_vm1, %v881_v14 }
 0x2ed   : > { %1147 = vmatpush.msrb.mxu3 %v1130_v1 }
 0x2ef   : > { %1148 = vmatpush.msrb.mxu3 %v1129_v2 }
 0x2f1   : > { %1149 = vmatpush.msrb.mxu3 %v1128_v3 }
 0x2f3   : > { %1150 = vmatpush.msrb.mxu3 %v1127_v10 }
 0x2f4   : > { %1348 = vmatmul.msk.f32.vlgmr.msra.gmra.mxu3 %vm689_vm0, %v2086_v23  ;;  %v1484_v23 = vld [vmem:[%s2182_s7] ss:$0 sm:$0xff] }
 0x2fc   : > { %1349 = vmatmul.msk.f32.gmra.mxu3 %vm689_vm0, %v2084_v22 }
 0x367   : > { %v862_v18 = vpop.f32.mrf.mxu3 }
 0x368   : > { %1346 = vmatmul.msk.f32.vlgmr.msrb.gmra.mxu2 %vm689_vm0, %v862_v18 }
 0x36f   : > { %v917_v19 = vpop.f32.mrf.mxu3 }
 0x370   : > { %1347 = vmatmul.msk.f32.gmra.mxu2 %vm689_vm0, %v917_v19 }
 0x377   : > { %v974_v21 = vpop.f32.mrf.mxu3 }
 0x37f   : > { %v977_v27 = vpop.f32.mrf.mxu3 }
 0x3eb   : > { %v951_v22 = vpop.f32.mrf.mxu2 }
 0x3ec   : > { %v975_v24 = vadd.f32 %v974_v21, %v951_v22 }
 0x3ee   : > { %v984_v25 = vadd.f32 %v1484_v23, %v975_v24 }
 0x3f0   : > { %v986_v26 = vmax.f32 %v984_v25, 0.0 }
 0x3f2   : > { %1350 = vmatmul.msk.f32.vlgmr.msrb.gmra.mxu0 %vm689_vm0, %v986_v26 }
 0x3f3   : > { %v954_v28 = vpop.f32.mrf.mxu2 }
 0x3f4   : > { %v978_v29 = vadd.f32 %v977_v27, %v954_v28 }
 0x3f6   : > { %v985_v30 = vadd.f32 %v1484_v23, %v978_v29 }
 0x3f8   : > { %v987_v31 = vmax.f32 %v985_v30, 0.0 }
 0x3fa   : > { %1351 = vmatmul.msk.f32.gmra.mxu0 %vm689_vm0, %v987_v31 }
 0x46f   : > { %v1019_v41 = vpop.f32.mrf.mxu0 }
 0x470   : > { %v1020_v42 = vadd.f32 %v1485_v40, %v1019_v41 }
 0x472   : > { %v1025_v43 = vmax.f32 %v1020_v42, 0.0 }
 0x474   : > { %v1027_v44 = vsel %vm689_vm0, %v1025_v43, 0.0 }
 0x475   : > { %v1028_v45 = vrot.slane %v1027_v44, 4 }
 0x477   : > { %v1029_v46 = vadd.f32 %v1028_v45, %v1027_v44  ;;  %v1022_v47 = vpop.f32.mrf.mxu0 }
 0x478   : > { %v1023_v48 = vadd.f32 %v1485_v40, %v1022_v47 }
 0x479   : > { %v1030_v49 = vrot.slane %v1029_v46, 2 }
 0x47a   : > { %v1026_v50 = vmax.f32 %v1023_v48, 0.0 }
 0x47b   : > { %v1031_v51 = vadd.f32 %v1030_v49, %v1029_v46 }
 0x47c   : > { %v1034_v52 = vsel %vm689_vm0, %v1026_v50, 0.0 }
 0x47d   : > { %v1032_v53 = vrot.slane %v1031_v51, 1  ;;  %v1035_v54 = vrot.slane %v1034_v52, 4 }
 0x47f   : > { %v1033_v55 = vadd.f32 %v1032_v53, %v1031_v51  ;;  %v1036_v56 = vadd.f32 %v1035_v54, %v1034_v52 }
 0x481   : > { %v1037_v57 = vrot.slane %v1036_v56, 2  ;;  %1353 = vmatmul.msk.f32.vlgmr.msra.gmra.mxu2 %vm689_vm0, %v1033_v55 }
 0x483   : > { %v1038_v58 = vadd.f32 %v1037_v57, %v1036_v56 }
 0x485   : > { %v1039_v59 = vrot.slane %v1038_v58, 1 }
 0x487   : > { %v1040_v60 = vadd.f32 %v1039_v59, %v1038_v58 }
 0x489   : > { %1352 = vmatmul.msk.f32.vlgmr.msrb.gmra.mxu1 %vm689_vm0, %v1040_v60 }
 0x504   : > { %v1092_v4 = vpop.f32.mrf.mxu2 }
 0x506   : > { %v1069_v5 = vpop.f32.mrf.mxu1 }
 0x507   : > { %v1093_v7 = vadd.f32 %v1092_v4, %v1069_v5 }
 0x509   : > { %v1096_v8 = vadd.f32 %v1095_v6, %v1093_v7 }
 0x50b   : > { %v1097_v9 = vmax.f32 %v1096_v8, 0.0 }
 0x50d   : > { %1354 = vmatmul.msk.f32.vlgmr.msra.gmra.mxu1 %vm689_vm0, %v1097_v9 }
 0x58a   : > { %v1123_v12 = vpop.f32.mrf.mxu1 }
 0x58b   : > { %v1124_v13 = vadd.f32 %v1123_v12, %v1102_v11 }
 0x58d   : > { %v1126_v14 = vmax.f32 %v1124_v13, 0.0 }
 0x58f   : > { %1355 = vmatmul.msk.f32.vlgmr.msrb.gmra.mxu3 %vm689_vm0, %v1126_v14 }
 0x612   : > { %v1152_v16 = vpop.f32.mrf.mxu3 }
 0x613   : > { %v1153_v17 = vadd.f32 %v1152_v16, %v1131_v15 }
 0x615   : > { %v1156_v18 = vsel %vm1155_vm10, %v1153_v17, -inf }
 0x616   : > { %1157 = vmax.xlane.f32.xlu1 %v1156_v18 }
 0x689   : > { %v1158_v19 = vpop.xlane.xlu1 %1157 }
 0x68a   : > { %v1159_v20 = vsub.f32 %v1153_v17, %v1158_v19 }
 0x68c   : > { %v1160_v21 = vmul.f32 1.442695, %v1159_v20 }
 0x68e   : > { %1494 = vpow2.f32 %v1160_v21 }
 0x694   : > { %v1495_v23 = vpop.eup %1494 }
 0x695   : > { %v1162_v22 = vsel %vm1155_vm10, %v1495_v23, 0.0 }
 0x696   : > { %1163 = vadd.xlane.f32.xlu2 %v1162_v22 }
 0x709   : > { %v1164_v24 = vpop.xlane.xlu2 %1163 }
 0x70a   : > { %1496 = vlog2.f32 %v1164_v24 }
 0x710   : > { %v1497_v25 = vpop.eup %1496 }
 0x711   : > { %v1166_v26 = vmul.f32 0.6931472, %v1497_v25 }
 0x713   : > { %v1167_v27 = vsub.f32 %v1159_v20, %v1166_v26 }
 0x715   : > { %1168 = vst.msk [vmem:[%s673_s21] sm:$0x1] %vm1155_vm10, %v1167_v27 }
 0x716   : > { %1765 = shalt.err (!%p1762_p8)
}
 0x717   : > { %1391 = dma.vmem_to_hbm [thread:$0]  (%p1960_p5), %s1181_s22, 16, %s1183_s23, %s1170_s1  }
 0x718 PF: > { %s2227_s30 = sld [smem:[#allocation26_spill]] }
 0x719   : > { %s2228_s25 = sld [smem:[#allocation23_spill]] }
 0x71e   : > { %p1438_p9 = scmp.ge.s32.totalorder %s2227_s30, 2 }
 0x71f   : > { %s1194_s19 = sand.u32 1, %s2228_s25  }
 0x720   : > { %p1419_p10 = pnand %p1438_p9, %p1964_p6  ;;  %s1195_s26 = scalar_lea.sflag [#allocation4], %s1194_s19 }
 0x722   : > { %p1420_p11 = pneg %p1419_p10 }
 0x724   : > { %1803 = dma.done.wait (%p1420_p11), %s1195_s26, 16  }
 0x725   : > { %1805 = vsyncadd (%p1420_p11), %s1195_s26, 4294967280  ;;  %s2230_s27 = sld [smem:[#allocation27_spill]] }
 0x726   : > { %s2231_s24 = sld [smem:[#allocation24_spill]] }
 0x727   : > { %s2232_s25 = sld [smem:[#allocation25_spill]] }
 0x728   : > { %s2233_s26 = sld [smem:[#allocation28_spill]] }
 0x72b   : > { %p32_p12 = scmp.ge.s32.totalorder %s2230_s27, 4  }
 0x72d   :  { %34 = sbr.rel (!%p32_p12) target bundleno = 14 (0xe), region = 156 }
 0x732   :  { %1200 = vsyncpa [#allocation3], 1 }
 0x733   :  { %1202 = vsyncpa [#allocation3 + $0x1], 1 }
 0x734   :  { %1203 = vsyncpa [#allocation6], 1 }
 0x735   :  { %1204 = vsyncpa [#allocation9], 1 }
 0x736   :  { %1205 = vsyncpa [#allocation12], 1 }
 0x737   :  { %1206 = vsyncpa [#allocation15], 1 }
 0x738   :  { %1207 = vsyncpa [#allocation4], 1 }
 0x739   :  { %1209 = vsyncpa [#allocation4 + $0x1], 1 }

</bundles_post_ra>
